<compile_context>
chip_gen: v7x
topology: tpu7x:2x2x1
jax: 0.10.0
libtpu: 0.0.40
codegen_flags: <defaults>
</compile_context>

<pallas_src>
import jax
import jax.numpy as jnp
from jax.experimental import pallas as pl
from jax.experimental.pallas import tpu as pltpu

INPUT_DIM = 6
HIDDEN_DIM = 90
NUM_LAYERS = 4
FC_OUT = 2

LANE = 128                    # TPU lane width
H_PAD = 128                   # hidden padded to one full vreg of lanes
GATES = 4                     # [i, f, g, o]  (torch.nn.LSTM gate order)
G_PAD = GATES * LANE          # 512: each gate block on its own 128-lane slab


def _sigmoid(z):
    # tanh lowers to the EUP (its own VLIW slot); cheaper than exp + divide.
    return 0.5 * (jnp.tanh(0.5 * z) + 1.0)


def _lstm_kernel(x_ref, wih_ref, whh_ref, bias_ref, h0_ref, c0_ref,
                 fcw_ref, fcb_ref,
                 sm_ref, zv_ref, prob_ref, hn_ref, cn_ref):
    # x_ref   : (1, 128)      bf16   layer-0 input (6 features, zero padded)
    # wih_ref : (L, 128, 512) bf16   input->gate weights (gate blocks 128-aligned)
    # whh_ref : (L, 128, 512) bf16   hidden->gate weights
    # bias_ref: (L, 1, 512)   f32    b_ih + b_hh (padded gate lanes are zero)
    # h0_ref  : (L, 1, 128)   f32    initial hidden (lanes 90..127 zero)
    # c0_ref  : (L, 1, 128)   f32    initial cell   (lanes 90..127 zero)
    # fcw_ref : (128, 2)      f32    fc weight (pre-transposed, padded rows zero)
    # fcb_ref : (1, 2)        f32    fc bias
    # sm_ref  : (1, 2)   f32  out    softmax(fc(h_top))
    # zv_ref  : (1, 1)   i32  out    argmax of softmax
    # prob_ref: (1, 1)   f32  out    max of softmax
    # hn_ref  : (L,1,128) f32 out    new hidden state (lane-dense, padded)
    # cn_ref  : (L,1,128) f32 out    new cell state   (lane-dense, padded)

    # Hidden-path matmuls depend only on h0 -> hoist them out of the serial
    # layer chain; the 4 independent matmuls pipeline through the MXU.
    gh = [
        jnp.dot(h0_ref[l].astype(jnp.bfloat16), whh_ref[l],
                preferred_element_type=jnp.float32) + bias_ref[l]
        for l in range(NUM_LAYERS)
    ]

    x = x_ref[...]                                  # bf16 (1, 128)
    h_new = None
    for l in range(NUM_LAYERS):                     # static, fully unrolled
        gates = jnp.dot(x, wih_ref[l],
                        preferred_element_type=jnp.float32) + gh[l]
        # 128-aligned gate slices: whole-vreg views, no cross-lane shuffles.
        i = _sigmoid(gates[:, 0 * LANE:1 * LANE])
        f = _sigmoid(gates[:, 1 * LANE:2 * LANE])
        g = jnp.tanh(gates[:, 2 * LANE:3 * LANE])
        o = _sigmoid(gates[:, 3 * LANE:4 * LANE])
        c_new = f * c0_ref[l] + i * g               # padded lanes stay exactly 0
        h_new = o * jnp.tanh(c_new)
        hn_ref[l] = h_new                           # full-vreg (unmasked) store
        cn_ref[l] = c_new
        x = h_new.astype(jnp.bfloat16)              # feeds next layer's MXU op

    # FC head + softmax + argmax, all in-kernel (avoids tiny XLA ops per call).
    fc_out = jnp.dot(h_new, fcw_ref[...],
                     preferred_element_type=jnp.float32) + fcb_ref[...]
    m = jnp.max(fc_out, axis=-1, keepdims=True)
    e = jnp.exp(fc_out - m)
    s = jnp.sum(e, axis=-1, keepdims=True)
    sm = e * pl.reciprocal(s, approx=True)
    sm_ref[...] = sm
    sm0 = sm[:, 0:1]
    sm1 = sm[:, 1:2]
    zv_ref[...] = (sm1 > sm0).astype(jnp.int32)     # ties -> index 0 (torch/argmax)
    prob_ref[...] = jnp.maximum(sm0, sm1)


def _pack_gate_weight(w_t, in_rows):
    """(in_rows, 4*90) -> (128, 4*128): pad rows to 128 and each gate's 90
    columns to a 128-lane block; padded entries are zero."""
    blocks = []
    for g in range(GATES):
        blk = w_t[:, g * HIDDEN_DIM:(g + 1) * HIDDEN_DIM]
        blk = jnp.pad(blk, ((0, H_PAD - in_rows), (0, LANE - HIDDEN_DIM)))
        blocks.append(blk)
    return jnp.concatenate(blocks, axis=1)


def make_params(key):
    """Deterministic synthetic parameters (torch.nn.LSTM / Linear shapes),
    repacked for the kernel: bf16 weights, 128-lane aligned gate blocks,
    combined biases."""
    H, L = HIDDEN_DIM, NUM_LAYERS
    k = 1.0 / jnp.sqrt(jnp.float32(H))
    keys = jax.random.split(key, 4 * L + 2)

    wih_p, whh_p, bias_p = [], [], []
    for l in range(L):
        in_dim = INPUT_DIM if l == 0 else H
        w_ih = jax.random.uniform(keys[4 * l + 0], (4 * H, in_dim), jnp.float32, -k, k)
        w_hh = jax.random.uniform(keys[4 * l + 1], (4 * H, H), jnp.float32, -k, k)
        b_ih = jax.random.uniform(keys[4 * l + 2], (4 * H,), jnp.float32, -k, k)
        b_hh = jax.random.uniform(keys[4 * l + 3], (4 * H,), jnp.float32, -k, k)

        wih_p.append(_pack_gate_weight(w_ih.T, in_dim))       # (128, 512)
        whh_p.append(_pack_gate_weight(w_hh.T, H))            # (128, 512)

        b = (b_ih + b_hh).reshape(GATES, H)                   # combined bias
        b = jnp.pad(b, ((0, 0), (0, LANE - H))).reshape(1, G_PAD)
        bias_p.append(b)

    fc_w = jax.random.uniform(keys[4 * L + 0], (FC_OUT, H), jnp.float32, -k, k)
    fc_b = jax.random.uniform(keys[4 * L + 1], (FC_OUT,), jnp.float32, -k, k)

    return {
        "wih_t": jnp.stack(wih_p).astype(jnp.bfloat16),       # (L, 128, 512) bf16
        "whh_t": jnp.stack(whh_p).astype(jnp.bfloat16),       # (L, 128, 512) bf16
        "bias":  jnp.stack(bias_p),                           # (L, 1, 512)   f32
        "fcw_t": jnp.pad(fc_w.T, ((0, H_PAD - H), (0, 0))),   # (128, 2)      f32
        "fcb":   fc_b.reshape(1, FC_OUT),                     # (1, 2)        f32
    }


@jax.jit
def lstm_forward(x_raw, params, h0, c0):
    """Equivalent of LSTM.forward: returns (zv, prob, softmax_out, h_n, c_n)."""
    H, L = HIDDEN_DIM, NUM_LAYERS
    # x = x[-1, 1:] -> (1, 6); pad to one full lane vreg; bf16 MXU operand.
    x = x_raw[-1, 1:1 + INPUT_DIM].reshape(1, INPUT_DIM).astype(jnp.float32)
    x_pad = jnp.pad(x, ((0, 0), (0, H_PAD - INPUT_DIM))).astype(jnp.bfloat16)

    h0_pad = jnp.pad(h0, ((0, 0), (0, 0), (0, H_PAD - H)))
    c0_pad = jnp.pad(c0, ((0, 0), (0, 0), (0, H_PAD - H)))

    vmem = pl.BlockSpec(memory_space=pltpu.MemorySpace.VMEM)
    sm, zv, prob, hn_pad, cn_pad = pl.pallas_call(
        _lstm_kernel,
        out_shape=(
            jax.ShapeDtypeStruct((1, FC_OUT), jnp.float32),
            jax.ShapeDtypeStruct((1, 1), jnp.int32),
            jax.ShapeDtypeStruct((1, 1), jnp.float32),
            jax.ShapeDtypeStruct((L, 1, H_PAD), jnp.float32),
            jax.ShapeDtypeStruct((L, 1, H_PAD), jnp.float32),
        ),
        in_specs=[vmem] * 8,
        out_specs=(vmem, vmem, vmem, vmem, vmem),
    )(x_pad, params["wih_t"], params["whh_t"], params["bias"],
      h0_pad, c0_pad, params["fcw_t"], params["fcb"])

    softmax_out = sm[0]                 # (2,), softmax over dim 0
    return zv[0, 0], prob[0, 0], softmax_out, hn_pad[:, :, :H], cn_pad[:, :, :H]


def _reference_forward(x_raw, params, h0, c0):
    """Pure-JAX reference (same bf16-rounded operands as the kernel)."""
    H = HIDDEN_DIM
    wih = params["wih_t"].astype(jnp.float32)
    whh = params["whh_t"].astype(jnp.float32)
    bias = params["bias"]

    def bf16_round(a):
        return a.astype(jnp.bfloat16).astype(jnp.float32)

    x = x_raw[-1, 1:1 + INPUT_DIM].reshape(1, INPUT_DIM).astype(jnp.float32)
    x = bf16_round(jnp.pad(x, ((0, 0), (0, H_PAD - INPUT_DIM))))
    h0p = jnp.pad(h0, ((0, 0), (0, 0), (0, H_PAD - H)))
    hn, cn = [], []
    for l in range(NUM_LAYERS):
        h_prev = bf16_round(h0p[l])
        gates = x @ wih[l] + h_prev @ whh[l] + bias[l]
        i = jax.nn.sigmoid(gates[:, 0 * LANE:0 * LANE + H])
        f = jax.nn.sigmoid(gates[:, 1 * LANE:1 * LANE + H])
        g = jnp.tanh(gates[:, 2 * LANE:2 * LANE + H])
        o = jax.nn.sigmoid(gates[:, 3 * LANE:3 * LANE + H])
        c_new = f * c0[l] + i * g
        h_new = o * jnp.tanh(c_new)
        hn.append(h_new)
        cn.append(c_new)
        x = bf16_round(jnp.pad(h_new, ((0, 0), (0, H_PAD - H))))
    fc_out = hn[-1] @ params["fcw_t"][:H] + params["fcb"]
    sm = jax.nn.softmax(fc_out, axis=-1)[0]
    return jnp.argmax(sm), jnp.max(sm), sm, jnp.stack(hn), jnp.stack(cn)


if __name__ == "__main__":
    key = jax.random.PRNGKey(0)
    k_param, k_x, k_h, k_c = jax.random.split(key, 4)

    params = make_params(k_param)

    # x as the torch module expects: last row, columns 1: are the 6 features.
    x_raw = jax.random.normal(k_x, (8, 7), jnp.float32)

    # h_n, c_n ~ Normal(0, 0.1) of shape (layers, batch=1, hidden) as in forward()
    h0 = 0.1 * jax.random.normal(k_h, (NUM_LAYERS, 1, HIDDEN_DIM), jnp.float32)
    c0 = 0.1 * jax.random.normal(k_c, (NUM_LAYERS, 1, HIDDEN_DIM), jnp.float32)

    zv, prob, sm, hn, cn = lstm_forward(x_raw, params, h0, c0)
    jax.block_until_ready((zv, prob, sm, hn, cn))

    # correctness check against pure-JAX reference
    zv_r, prob_r, sm_r, hn_r, cn_r = _reference_forward(x_raw, params, h0, c0)
    assert int(zv) == int(zv_r)
    assert jnp.allclose(prob, prob_r, rtol=1e-3, atol=1e-3)
    assert jnp.allclose(sm, sm_r, rtol=1e-3, atol=1e-3)
    assert jnp.allclose(hn, hn_r, rtol=1e-3, atol=1e-3)
    assert jnp.allclose(cn, cn_r, rtol=1e-3, atol=1e-3)

    print("KERNEL_OK")
</pallas_src>

<mosaic_0001>
module attributes {stable_mosaic.version = 11 : i64} {
  func.func @_lstm_kernel(%arg0: memref<1x128xbf16, #tpu.memory_space<vmem>>, %arg1: memref<4x128x512xbf16, #tpu.memory_space<vmem>>, %arg2: memref<4x128x512xbf16, #tpu.memory_space<vmem>>, %arg3: memref<4x1x512xf32, #tpu.memory_space<vmem>>, %arg4: memref<4x1x128xf32, #tpu.memory_space<vmem>>, %arg5: memref<4x1x128xf32, #tpu.memory_space<vmem>>, %arg6: memref<128x2xf32, #tpu.memory_space<vmem>>, %arg7: memref<1x2xf32, #tpu.memory_space<vmem>>, %arg8: memref<1x2xf32, #tpu.memory_space<vmem>>, %arg9: memref<1x1xi32, #tpu.memory_space<vmem>>, %arg10: memref<1x1xf32, #tpu.memory_space<vmem>>, %arg11: memref<4x1x128xf32, #tpu.memory_space<vmem>>, %arg12: memref<4x1x128xf32, #tpu.memory_space<vmem>>) attributes {dimension_semantics = [], scalar_prefetch = 0 : i64, scratch_operands = 0 : i64, tpu.core_type = #tpu.core_type<tc>} {
    %c0 = arith.constant 0 : index
    %c0_0 = arith.constant 0 : index
    %c0_1 = arith.constant 0 : index
    %0 = vector.load %arg4[%c0, %c0_0, %c0_1] : memref<4x1x128xf32, #tpu.memory_space<vmem>>, vector<1x1x128xf32>
    %1 = vector.shape_cast %0 : vector<1x1x128xf32> to vector<1x128xf32>
    %2 = arith.truncf %1 : vector<1x128xf32> to vector<1x128xbf16>
    %c0_2 = arith.constant 0 : index
    %c0_3 = arith.constant 0 : index
    %c0_4 = arith.constant 0 : index
    %3 = vector.load %arg2[%c0_2, %c0_3, %c0_4] : memref<4x128x512xbf16, #tpu.memory_space<vmem>>, vector<1x128x512xbf16>
    %4 = vector.shape_cast %3 : vector<1x128x512xbf16> to vector<128x512xbf16>
    %cst = arith.constant dense<0.000000e+00> : vector<1x512xf32>
    %5 = tpu.matmul %2, %4, %cst {dimension_numbers = #tpu.dot_dimension_numbers<[1], [0], [0], [1], [0, 0, 1, 1], [], []>} : vector<1x128xbf16>, vector<128x512xbf16>, vector<1x512xf32> -> vector<1x512xf32>
    %c0_5 = arith.constant 0 : index
    %c0_6 = arith.constant 0 : index
    %c0_7 = arith.constant 0 : index
    %6 = vector.load %arg3[%c0_5, %c0_6, %c0_7] : memref<4x1x512xf32, #tpu.memory_space<vmem>>, vector<1x1x512xf32>
    %7 = vector.shape_cast %6 : vector<1x1x512xf32> to vector<1x512xf32>
    %8 = arith.addf %5, %7 : vector<1x512xf32>
    %c1 = arith.constant 1 : index
    %c0_8 = arith.constant 0 : index
    %c0_9 = arith.constant 0 : index
    %9 = vector.load %arg4[%c1, %c0_8, %c0_9] : memref<4x1x128xf32, #tpu.memory_space<vmem>>, vector<1x1x128xf32>
    %10 = vector.shape_cast %9 : vector<1x1x128xf32> to vector<1x128xf32>
    %11 = arith.truncf %10 : vector<1x128xf32> to vector<1x128xbf16>
    %c1_10 = arith.constant 1 : index
    %c0_11 = arith.constant 0 : index
    %c0_12 = arith.constant 0 : index
    %12 = vector.load %arg2[%c1_10, %c0_11, %c0_12] : memref<4x128x512xbf16, #tpu.memory_space<vmem>>, vector<1x128x512xbf16>
    %13 = vector.shape_cast %12 : vector<1x128x512xbf16> to vector<128x512xbf16>
    %cst_13 = arith.constant dense<0.000000e+00> : vector<1x512xf32>
    %14 = tpu.matmul %11, %13, %cst_13 {dimension_numbers = #tpu.dot_dimension_numbers<[1], [0], [0], [1], [0, 0, 1, 1], [], []>} : vector<1x128xbf16>, vector<128x512xbf16>, vector<1x512xf32> -> vector<1x512xf32>
    %c1_14 = arith.constant 1 : index
    %c0_15 = arith.constant 0 : index
    %c0_16 = arith.constant 0 : index
    %15 = vector.load %arg3[%c1_14, %c0_15, %c0_16] : memref<4x1x512xf32, #tpu.memory_space<vmem>>, vector<1x1x512xf32>
    %16 = vector.shape_cast %15 : vector<1x1x512xf32> to vector<1x512xf32>
    %17 = arith.addf %14, %16 : vector<1x512xf32>
    %c2 = arith.constant 2 : index
    %c0_17 = arith.constant 0 : index
    %c0_18 = arith.constant 0 : index
    %18 = vector.load %arg4[%c2, %c0_17, %c0_18] : memref<4x1x128xf32, #tpu.memory_space<vmem>>, vector<1x1x128xf32>
    %19 = vector.shape_cast %18 : vector<1x1x128xf32> to vector<1x128xf32>
    %20 = arith.truncf %19 : vector<1x128xf32> to vector<1x128xbf16>
    %c2_19 = arith.constant 2 : index
    %c0_20 = arith.constant 0 : index
    %c0_21 = arith.constant 0 : index
    %21 = vector.load %arg2[%c2_19, %c0_20, %c0_21] : memref<4x128x512xbf16, #tpu.memory_space<vmem>>, vector<1x128x512xbf16>
    %22 = vector.shape_cast %21 : vector<1x128x512xbf16> to vector<128x512xbf16>
    %cst_22 = arith.constant dense<0.000000e+00> : vector<1x512xf32>
    %23 = tpu.matmul %20, %22, %cst_22 {dimension_numbers = #tpu.dot_dimension_numbers<[1], [0], [0], [1], [0, 0, 1, 1], [], []>} : vector<1x128xbf16>, vector<128x512xbf16>, vector<1x512xf32> -> vector<1x512xf32>
    %c2_23 = arith.constant 2 : index
    %c0_24 = arith.constant 0 : index
    %c0_25 = arith.constant 0 : index
    %24 = vector.load %arg3[%c2_23, %c0_24, %c0_25] : memref<4x1x512xf32, #tpu.memory_space<vmem>>, vector<1x1x512xf32>
    %25 = vector.shape_cast %24 : vector<1x1x512xf32> to vector<1x512xf32>
    %26 = arith.addf %23, %25 : vector<1x512xf32>
    %c3 = arith.constant 3 : index
    %c0_26 = arith.constant 0 : index
    %c0_27 = arith.constant 0 : index
    %27 = vector.load %arg4[%c3, %c0_26, %c0_27] : memref<4x1x128xf32, #tpu.memory_space<vmem>>, vector<1x1x128xf32>
    %28 = vector.shape_cast %27 : vector<1x1x128xf32> to vector<1x128xf32>
    %29 = arith.truncf %28 : vector<1x128xf32> to vector<1x128xbf16>
    %c3_28 = arith.constant 3 : index
    %c0_29 = arith.constant 0 : index
    %c0_30 = arith.constant 0 : index
    %30 = vector.load %arg2[%c3_28, %c0_29, %c0_30] : memref<4x128x512xbf16, #tpu.memory_space<vmem>>, vector<1x128x512xbf16>
    %31 = vector.shape_cast %30 : vector<1x128x512xbf16> to vector<128x512xbf16>
    %cst_31 = arith.constant dense<0.000000e+00> : vector<1x512xf32>
    %32 = tpu.matmul %29, %31, %cst_31 {dimension_numbers = #tpu.dot_dimension_numbers<[1], [0], [0], [1], [0, 0, 1, 1], [], []>} : vector<1x128xbf16>, vector<128x512xbf16>, vector<1x512xf32> -> vector<1x512xf32>
    %c3_32 = arith.constant 3 : index
    %c0_33 = arith.constant 0 : index
    %c0_34 = arith.constant 0 : index
    %33 = vector.load %arg3[%c3_32, %c0_33, %c0_34] : memref<4x1x512xf32, #tpu.memory_space<vmem>>, vector<1x1x512xf32>
    %34 = vector.shape_cast %33 : vector<1x1x512xf32> to vector<1x512xf32>
    %35 = arith.addf %32, %34 : vector<1x512xf32>
    %c0_35 = arith.constant 0 : index
    %c0_36 = arith.constant 0 : index
    %36 = vector.load %arg0[%c0_35, %c0_36] : memref<1x128xbf16, #tpu.memory_space<vmem>>, vector<1x128xbf16>
    %c0_37 = arith.constant 0 : index
    %c0_38 = arith.constant 0 : index
    %c0_39 = arith.constant 0 : index
    %37 = vector.load %arg1[%c0_37, %c0_38, %c0_39] : memref<4x128x512xbf16, #tpu.memory_space<vmem>>, vector<1x128x512xbf16>
    %38 = vector.shape_cast %37 : vector<1x128x512xbf16> to vector<128x512xbf16>
    %cst_40 = arith.constant dense<0.000000e+00> : vector<1x512xf32>
    %39 = tpu.matmul %36, %38, %cst_40 {dimension_numbers = #tpu.dot_dimension_numbers<[1], [0], [0], [1], [0, 0, 1, 1], [], []>} : vector<1x128xbf16>, vector<128x512xbf16>, vector<1x512xf32> -> vector<1x512xf32>
    %40 = arith.addf %39, %8 : vector<1x512xf32>
    %41 = vector.extract_strided_slice %40 {offsets = [0, 0], sizes = [1, 128], strides = [1, 1]} : vector<1x512xf32> to vector<1x128xf32>
    %cst_41 = arith.constant 5.000000e-01 : f32
    %42 = vector.broadcast %cst_41 : f32 to vector<1x128xf32>
    %43 = arith.mulf %42, %41 : vector<1x128xf32>
    %44 = math.tanh %43 : vector<1x128xf32>
    %cst_42 = arith.constant 1.000000e+00 : f32
    %45 = vector.broadcast %cst_42 : f32 to vector<1x128xf32>
    %46 = arith.addf %44, %45 : vector<1x128xf32>
    %cst_43 = arith.constant 5.000000e-01 : f32
    %47 = vector.broadcast %cst_43 : f32 to vector<1x128xf32>
    %48 = arith.mulf %47, %46 : vector<1x128xf32>
    %49 = vector.extract_strided_slice %40 {offsets = [0, 128], sizes = [1, 128], strides = [1, 1]} : vector<1x512xf32> to vector<1x128xf32>
    %cst_44 = arith.constant 5.000000e-01 : f32
    %50 = vector.broadcast %cst_44 : f32 to vector<1x128xf32>
    %51 = arith.mulf %50, %49 : vector<1x128xf32>
    %52 = math.tanh %51 : vector<1x128xf32>
    %cst_45 = arith.constant 1.000000e+00 : f32
    %53 = vector.broadcast %cst_45 : f32 to vector<1x128xf32>
    %54 = arith.addf %52, %53 : vector<1x128xf32>
    %cst_46 = arith.constant 5.000000e-01 : f32
    %55 = vector.broadcast %cst_46 : f32 to vector<1x128xf32>
    %56 = arith.mulf %55, %54 : vector<1x128xf32>
    %57 = vector.extract_strided_slice %40 {offsets = [0, 256], sizes = [1, 128], strides = [1, 1]} : vector<1x512xf32> to vector<1x128xf32>
    %58 = math.tanh %57 : vector<1x128xf32>
    %59 = vector.extract_strided_slice %40 {offsets = [0, 384], sizes = [1, 128], strides = [1, 1]} : vector<1x512xf32> to vector<1x128xf32>
    %cst_47 = arith.constant 5.000000e-01 : f32
    %60 = vector.broadcast %cst_47 : f32 to vector<1x128xf32>
    %61 = arith.mulf %60, %59 : vector<1x128xf32>
    %62 = math.tanh %61 : vector<1x128xf32>
    %cst_48 = arith.constant 1.000000e+00 : f32
    %63 = vector.broadcast %cst_48 : f32 to vector<1x128xf32>
    %64 = arith.addf %62, %63 : vector<1x128xf32>
    %cst_49 = arith.constant 5.000000e-01 : f32
    %65 = vector.broadcast %cst_49 : f32 to vector<1x128xf32>
    %66 = arith.mulf %65, %64 : vector<1x128xf32>
    %c0_50 = arith.constant 0 : index
    %c0_51 = arith.constant 0 : index
    %c0_52 = arith.constant 0 : index
    %67 = vector.load %arg5[%c0_50, %c0_51, %c0_52] : memref<4x1x128xf32, #tpu.memory_space<vmem>>, vector<1x1x128xf32>
    %68 = vector.shape_cast %67 : vector<1x1x128xf32> to vector<1x128xf32>
    %69 = arith.mulf %56, %68 : vector<1x128xf32>
    %70 = arith.mulf %48, %58 : vector<1x128xf32>
    %71 = arith.addf %69, %70 : vector<1x128xf32>
    %72 = math.tanh %71 : vector<1x128xf32>
    %73 = arith.mulf %66, %72 : vector<1x128xf32>
    %c0_53 = arith.constant 0 : index
    %c0_54 = arith.constant 0 : index
    %c0_55 = arith.constant 0 : index
    %74 = vector.load %arg11[%c0_53, %c0_54, %c0_55] : memref<4x1x128xf32, #tpu.memory_space<vmem>>, vector<1x1x128xf32>
    %75 = vector.shape_cast %74 : vector<1x1x128xf32> to vector<1x128xf32>
    %76 = vector.shape_cast %73 : vector<1x128xf32> to vector<1x1x128xf32>
    tpu.vector_store %arg11[%c0_53, %c0_54, %c0_55], %76 {strides = array<i32>} : memref<4x1x128xf32, #tpu.memory_space<vmem>>, vector<1x1x128xf32>,
    %c0_56 = arith.constant 0 : index
    %c0_57 = arith.constant 0 : index
    %c0_58 = arith.constant 0 : index
    %77 = vector.load %arg12[%c0_56, %c0_57, %c0_58] : memref<4x1x128xf32, #tpu.memory_space<vmem>>, vector<1x1x128xf32>
    %78 = vector.shape_cast %77 : vector<1x1x128xf32> to vector<1x128xf32>
    %79 = vector.shape_cast %71 : vector<1x128xf32> to vector<1x1x128xf32>
    tpu.vector_store %arg12[%c0_56, %c0_57, %c0_58], %79 {strides = array<i32>} : memref<4x1x128xf32, #tpu.memory_space<vmem>>, vector<1x1x128xf32>,
    %80 = arith.truncf %73 : vector<1x128xf32> to vector<1x128xbf16>
    %c1_59 = arith.constant 1 : index
    %c0_60 = arith.constant 0 : index
    %c0_61 = arith.constant 0 : index
    %81 = vector.load %arg1[%c1_59, %c0_60, %c0_61] : memref<4x128x512xbf16, #tpu.memory_space<vmem>>, vector<1x128x512xbf16>
    %82 = vector.shape_cast %81 : vector<1x128x512xbf16> to vector<128x512xbf16>
    %cst_62 = arith.constant dense<0.000000e+00> : vector<1x512xf32>
    %83 = tpu.matmul %80, %82, %cst_62 {dimension_numbers = #tpu.dot_dimension_numbers<[1], [0], [0], [1], [0, 0, 1, 1], [], []>} : vector<1x128xbf16>, vector<128x512xbf16>, vector<1x512xf32> -> vector<1x512xf32>
    %84 = arith.addf %83, %17 : vector<1x512xf32>
    %85 = vector.extract_strided_slice %84 {offsets = [0, 0], sizes = [1, 128], strides = [1, 1]} : vector<1x512xf32> to vector<1x128xf32>
    %cst_63 = arith.constant 5.000000e-01 : f32
    %86 = vector.broadcast %cst_63 : f32 to vector<1x128xf32>
    %87 = arith.mulf %86, %85 : vector<1x128xf32>
    %88 = math.tanh %87 : vector<1x128xf32>
    %cst_64 = arith.constant 1.000000e+00 : f32
    %89 = vector.broadcast %cst_64 : f32 to vector<1x128xf32>
    %90 = arith.addf %88, %89 : vector<1x128xf32>
    %cst_65 = arith.constant 5.000000e-01 : f32
    %91 = vector.broadcast %cst_65 : f32 to vector<1x128xf32>
    %92 = arith.mulf %91, %90 : vector<1x128xf32>
    %93 = vector.extract_strided_slice %84 {offsets = [0, 128], sizes = [1, 128], strides = [1, 1]} : vector<1x512xf32> to vector<1x128xf32>
    %cst_66 = arith.constant 5.000000e-01 : f32
    %94 = vector.broadcast %cst_66 : f32 to vector<1x128xf32>
    %95 = arith.mulf %94, %93 : vector<1x128xf32>
    %96 = math.tanh %95 : vector<1x128xf32>
    %cst_67 = arith.constant 1.000000e+00 : f32
    %97 = vector.broadcast %cst_67 : f32 to vector<1x128xf32>
    %98 = arith.addf %96, %97 : vector<1x128xf32>
    %cst_68 = arith.constant 5.000000e-01 : f32
    %99 = vector.broadcast %cst_68 : f32 to vector<1x128xf32>
    %100 = arith.mulf %99, %98 : vector<1x128xf32>
    %101 = vector.extract_strided_slice %84 {offsets = [0, 256], sizes = [1, 128], strides = [1, 1]} : vector<1x512xf32> to vector<1x128xf32>
    %102 = math.tanh %101 : vector<1x128xf32>
    %103 = vector.extract_strided_slice %84 {offsets = [0, 384], sizes = [1, 128], strides = [1, 1]} : vector<1x512xf32> to vector<1x128xf32>
    %cst_69 = arith.constant 5.000000e-01 : f32
    %104 = vector.broadcast %cst_69 : f32 to vector<1x128xf32>
    %105 = arith.mulf %104, %103 : vector<1x128xf32>
    %106 = math.tanh %105 : vector<1x128xf32>
    %cst_70 = arith.constant 1.000000e+00 : f32
    %107 = vector.broadcast %cst_70 : f32 to vector<1x128xf32>
    %108 = arith.addf %106, %107 : vector<1x128xf32>
    %cst_71 = arith.constant 5.000000e-01 : f32
    %109 = vector.broadcast %cst_71 : f32 to vector<1x128xf32>
    %110 = arith.mulf %109, %108 : vector<1x128xf32>
    %c1_72 = arith.constant 1 : index
    %c0_73 = arith.constant 0 : index
    %c0_74 = arith.constant 0 : index
    %111 = vector.load %arg5[%c1_72, %c0_73, %c0_74] : memref<4x1x128xf32, #tpu.memory_space<vmem>>, vector<1x1x128xf32>
    %112 = vector.shape_cast %111 : vector<1x1x128xf32> to vector<1x128xf32>
    %113 = arith.mulf %100, %112 : vector<1x128xf32>
    %114 = arith.mulf %92, %102 : vector<1x128xf32>
    %115 = arith.addf %113, %114 : vector<1x128xf32>
    %116 = math.tanh %115 : vector<1x128xf32>
    %117 = arith.mulf %110, %116 : vector<1x128xf32>
    %c1_75 = arith.constant 1 : index
    %c0_76 = arith.constant 0 : index
    %c0_77 = arith.constant 0 : index
    %118 = vector.load %arg11[%c1_75, %c0_76, %c0_77] : memref<4x1x128xf32, #tpu.memory_space<vmem>>, vector<1x1x128xf32>
    %119 = vector.shape_cast %118 : vector<1x1x128xf32> to vector<1x128xf32>
    %120 = vector.shape_cast %117 : vector<1x128xf32> to vector<1x1x128xf32>
    tpu.vector_store %arg11[%c1_75, %c0_76, %c0_77], %120 {strides = array<i32>} : memref<4x1x128xf32, #tpu.memory_space<vmem>>, vector<1x1x128xf32>,
    %c1_78 = arith.constant 1 : index
    %c0_79 = arith.constant 0 : index
    %c0_80 = arith.constant 0 : index
    %121 = vector.load %arg12[%c1_78, %c0_79, %c0_80] : memref<4x1x128xf32, #tpu.memory_space<vmem>>, vector<1x1x128xf32>
    %122 = vector.shape_cast %121 : vector<1x1x128xf32> to vector<1x128xf32>
    %123 = vector.shape_cast %115 : vector<1x128xf32> to vector<1x1x128xf32>
    tpu.vector_store %arg12[%c1_78, %c0_79, %c0_80], %123 {strides = array<i32>} : memref<4x1x128xf32, #tpu.memory_space<vmem>>, vector<1x1x128xf32>,
    %124 = arith.truncf %117 : vector<1x128xf32> to vector<1x128xbf16>
    %c2_81 = arith.constant 2 : index
    %c0_82 = arith.constant 0 : index
    %c0_83 = arith.constant 0 : index
    %125 = vector.load %arg1[%c2_81, %c0_82, %c0_83] : memref<4x128x512xbf16, #tpu.memory_space<vmem>>, vector<1x128x512xbf16>
    %126 = vector.shape_cast %125 : vector<1x128x512xbf16> to vector<128x512xbf16>
    %cst_84 = arith.constant dense<0.000000e+00> : vector<1x512xf32>
    %127 = tpu.matmul %124, %126, %cst_84 {dimension_numbers = #tpu.dot_dimension_numbers<[1], [0], [0], [1], [0, 0, 1, 1], [], []>} : vector<1x128xbf16>, vector<128x512xbf16>, vector<1x512xf32> -> vector<1x512xf32>
    %128 = arith.addf %127, %26 : vector<1x512xf32>
    %129 = vector.extract_strided_slice %128 {offsets = [0, 0], sizes = [1, 128], strides = [1, 1]} : vector<1x512xf32> to vector<1x128xf32>
    %cst_85 = arith.constant 5.000000e-01 : f32
    %130 = vector.broadcast %cst_85 : f32 to vector<1x128xf32>
    %131 = arith.mulf %130, %129 : vector<1x128xf32>
    %132 = math.tanh %131 : vector<1x128xf32>
    %cst_86 = arith.constant 1.000000e+00 : f32
    %133 = vector.broadcast %cst_86 : f32 to vector<1x128xf32>
    %134 = arith.addf %132, %133 : vector<1x128xf32>
    %cst_87 = arith.constant 5.000000e-01 : f32
    %135 = vector.broadcast %cst_87 : f32 to vector<1x128xf32>
    %136 = arith.mulf %135, %134 : vector<1x128xf32>
    %137 = vector.extract_strided_slice %128 {offsets = [0, 128], sizes = [1, 128], strides = [1, 1]} : vector<1x512xf32> to vector<1x128xf32>
    %cst_88 = arith.constant 5.000000e-01 : f32
    %138 = vector.broadcast %cst_88 : f32 to vector<1x128xf32>
    %139 = arith.mulf %138, %137 : vector<1x128xf32>
    %140 = math.tanh %139 : vector<1x128xf32>
    %cst_89 = arith.constant 1.000000e+00 : f32
    %141 = vector.broadcast %cst_89 : f32 to vector<1x128xf32>
    %142 = arith.addf %140, %141 : vector<1x128xf32>
    %cst_90 = arith.constant 5.000000e-01 : f32
    %143 = vector.broadcast %cst_90 : f32 to vector<1x128xf32>
    %144 = arith.mulf %143, %142 : vector<1x128xf32>
    %145 = vector.extract_strided_slice %128 {offsets = [0, 256], sizes = [1, 128], strides = [1, 1]} : vector<1x512xf32> to vector<1x128xf32>
    %146 = math.tanh %145 : vector<1x128xf32>
    %147 = vector.extract_strided_slice %128 {offsets = [0, 384], sizes = [1, 128], strides = [1, 1]} : vector<1x512xf32> to vector<1x128xf32>
    %cst_91 = arith.constant 5.000000e-01 : f32
    %148 = vector.broadcast %cst_91 : f32 to vector<1x128xf32>
    %149 = arith.mulf %148, %147 : vector<1x128xf32>
    %150 = math.tanh %149 : vector<1x128xf32>
    %cst_92 = arith.constant 1.000000e+00 : f32
    %151 = vector.broadcast %cst_92 : f32 to vector<1x128xf32>
    %152 = arith.addf %150, %151 : vector<1x128xf32>
    %cst_93 = arith.constant 5.000000e-01 : f32
    %153 = vector.broadcast %cst_93 : f32 to vector<1x128xf32>
    %154 = arith.mulf %153, %152 : vector<1x128xf32>
    %c2_94 = arith.constant 2 : index
    %c0_95 = arith.constant 0 : index
    %c0_96 = arith.constant 0 : index
    %155 = vector.load %arg5[%c2_94, %c0_95, %c0_96] : memref<4x1x128xf32, #tpu.memory_space<vmem>>, vector<1x1x128xf32>
    %156 = vector.shape_cast %155 : vector<1x1x128xf32> to vector<1x128xf32>
    %157 = arith.mulf %144, %156 : vector<1x128xf32>
    %158 = arith.mulf %136, %146 : vector<1x128xf32>
    %159 = arith.addf %157, %158 : vector<1x128xf32>
    %160 = math.tanh %159 : vector<1x128xf32>
    %161 = arith.mulf %154, %160 : vector<1x128xf32>
    %c2_97 = arith.constant 2 : index
    %c0_98 = arith.constant 0 : index
    %c0_99 = arith.constant 0 : index
    %162 = vector.load %arg11[%c2_97, %c0_98, %c0_99] : memref<4x1x128xf32, #tpu.memory_space<vmem>>, vector<1x1x128xf32>
    %163 = vector.shape_cast %162 : vector<1x1x128xf32> to vector<1x128xf32>
    %164 = vector.shape_cast %161 : vector<1x128xf32> to vector<1x1x128xf32>
    tpu.vector_store %arg11[%c2_97, %c0_98, %c0_99], %164 {strides = array<i32>} : memref<4x1x128xf32, #tpu.memory_space<vmem>>, vector<1x1x128xf32>,
    %c2_100 = arith.constant 2 : index
    %c0_101 = arith.constant 0 : index
    %c0_102 = arith.constant 0 : index
    %165 = vector.load %arg12[%c2_100, %c0_101, %c0_102] : memref<4x1x128xf32, #tpu.memory_space<vmem>>, vector<1x1x128xf32>
    %166 = vector.shape_cast %165 : vector<1x1x128xf32> to vector<1x128xf32>
    %167 = vector.shape_cast %159 : vector<1x128xf32> to vector<1x1x128xf32>
    tpu.vector_store %arg12[%c2_100, %c0_101, %c0_102], %167 {strides = array<i32>} : memref<4x1x128xf32, #tpu.memory_space<vmem>>, vector<1x1x128xf32>,
    %168 = arith.truncf %161 : vector<1x128xf32> to vector<1x128xbf16>
    %c3_103 = arith.constant 3 : index
    %c0_104 = arith.constant 0 : index
    %c0_105 = arith.constant 0 : index
    %169 = vector.load %arg1[%c3_103, %c0_104, %c0_105] : memref<4x128x512xbf16, #tpu.memory_space<vmem>>, vector<1x128x512xbf16>
    %170 = vector.shape_cast %169 : vector<1x128x512xbf16> to vector<128x512xbf16>
    %cst_106 = arith.constant dense<0.000000e+00> : vector<1x512xf32>
    %171 = tpu.matmul %168, %170, %cst_106 {dimension_numbers = #tpu.dot_dimension_numbers<[1], [0], [0], [1], [0, 0, 1, 1], [], []>} : vector<1x128xbf16>, vector<128x512xbf16>, vector<1x512xf32> -> vector<1x512xf32>
    %172 = arith.addf %171, %35 : vector<1x512xf32>
    %173 = vector.extract_strided_slice %172 {offsets = [0, 0], sizes = [1, 128], strides = [1, 1]} : vector<1x512xf32> to vector<1x128xf32>
    %cst_107 = arith.constant 5.000000e-01 : f32
    %174 = vector.broadcast %cst_107 : f32 to vector<1x128xf32>
    %175 = arith.mulf %174, %173 : vector<1x128xf32>
    %176 = math.tanh %175 : vector<1x128xf32>
    %cst_108 = arith.constant 1.000000e+00 : f32
    %177 = vector.broadcast %cst_108 : f32 to vector<1x128xf32>
    %178 = arith.addf %176, %177 : vector<1x128xf32>
    %cst_109 = arith.constant 5.000000e-01 : f32
    %179 = vector.broadcast %cst_109 : f32 to vector<1x128xf32>
    %180 = arith.mulf %179, %178 : vector<1x128xf32>
    %181 = vector.extract_strided_slice %172 {offsets = [0, 128], sizes = [1, 128], strides = [1, 1]} : vector<1x512xf32> to vector<1x128xf32>
    %cst_110 = arith.constant 5.000000e-01 : f32
    %182 = vector.broadcast %cst_110 : f32 to vector<1x128xf32>
    %183 = arith.mulf %182, %181 : vector<1x128xf32>
    %184 = math.tanh %183 : vector<1x128xf32>
    %cst_111 = arith.constant 1.000000e+00 : f32
    %185 = vector.broadcast %cst_111 : f32 to vector<1x128xf32>
    %186 = arith.addf %184, %185 : vector<1x128xf32>
    %cst_112 = arith.constant 5.000000e-01 : f32
    %187 = vector.broadcast %cst_112 : f32 to vector<1x128xf32>
    %188 = arith.mulf %187, %186 : vector<1x128xf32>
    %189 = vector.extract_strided_slice %172 {offsets = [0, 256], sizes = [1, 128], strides = [1, 1]} : vector<1x512xf32> to vector<1x128xf32>
    %190 = math.tanh %189 : vector<1x128xf32>
    %191 = vector.extract_strided_slice %172 {offsets = [0, 384], sizes = [1, 128], strides = [1, 1]} : vector<1x512xf32> to vector<1x128xf32>
    %cst_113 = arith.constant 5.000000e-01 : f32
    %192 = vector.broadcast %cst_113 : f32 to vector<1x128xf32>
    %193 = arith.mulf %192, %191 : vector<1x128xf32>
    %194 = math.tanh %193 : vector<1x128xf32>
    %cst_114 = arith.constant 1.000000e+00 : f32
    %195 = vector.broadcast %cst_114 : f32 to vector<1x128xf32>
    %196 = arith.addf %194, %195 : vector<1x128xf32>
    %cst_115 = arith.constant 5.000000e-01 : f32
    %197 = vector.broadcast %cst_115 : f32 to vector<1x128xf32>
    %198 = arith.mulf %197, %196 : vector<1x128xf32>
    %c3_116 = arith.constant 3 : index
    %c0_117 = arith.constant 0 : index
    %c0_118 = arith.constant 0 : index
    %199 = vector.load %arg5[%c3_116, %c0_117, %c0_118] : memref<4x1x128xf32, #tpu.memory_space<vmem>>, vector<1x1x128xf32>
    %200 = vector.shape_cast %199 : vector<1x1x128xf32> to vector<1x128xf32>
    %201 = arith.mulf %188, %200 : vector<1x128xf32>
    %202 = arith.mulf %180, %190 : vector<1x128xf32>
    %203 = arith.addf %201, %202 : vector<1x128xf32>
    %204 = math.tanh %203 : vector<1x128xf32>
    %205 = arith.mulf %198, %204 : vector<1x128xf32>
    %c3_119 = arith.constant 3 : index
    %c0_120 = arith.constant 0 : index
    %c0_121 = arith.constant 0 : index
    %206 = vector.load %arg11[%c3_119, %c0_120, %c0_121] : memref<4x1x128xf32, #tpu.memory_space<vmem>>, vector<1x1x128xf32>
    %207 = vector.shape_cast %206 : vector<1x1x128xf32> to vector<1x128xf32>
    %208 = vector.shape_cast %205 : vector<1x128xf32> to vector<1x1x128xf32>
    tpu.vector_store %arg11[%c3_119, %c0_120, %c0_121], %208 {strides = array<i32>} : memref<4x1x128xf32, #tpu.memory_space<vmem>>, vector<1x1x128xf32>,
    %c3_122 = arith.constant 3 : index
    %c0_123 = arith.constant 0 : index
    %c0_124 = arith.constant 0 : index
    %209 = vector.load %arg12[%c3_122, %c0_123, %c0_124] : memref<4x1x128xf32, #tpu.memory_space<vmem>>, vector<1x1x128xf32>
    %210 = vector.shape_cast %209 : vector<1x1x128xf32> to vector<1x128xf32>
    %211 = vector.shape_cast %203 : vector<1x128xf32> to vector<1x1x128xf32>
    tpu.vector_store %arg12[%c3_122, %c0_123, %c0_124], %211 {strides = array<i32>} : memref<4x1x128xf32, #tpu.memory_space<vmem>>, vector<1x1x128xf32>,
    %c0_125 = arith.constant 0 : index
    %c0_126 = arith.constant 0 : index
    %212 = vector.load %arg6[%c0_125, %c0_126] : memref<128x2xf32, #tpu.memory_space<vmem>>, vector<128x2xf32>
    %cst_127 = arith.constant dense<0.000000e+00> : vector<1x2xf32>
    %213 = tpu.matmul %205, %212, %cst_127 {dimension_numbers = #tpu.dot_dimension_numbers<[1], [0], [0], [1], [0, 0, 1, 1], [], []>} : vector<1x128xf32>, vector<128x2xf32>, vector<1x2xf32> -> vector<1x2xf32>
    %c0_128 = arith.constant 0 : index
    %c0_129 = arith.constant 0 : index
    %214 = vector.load %arg7[%c0_128, %c0_129] : memref<1x2xf32, #tpu.memory_space<vmem>>, vector<1x2xf32>
    %215 = arith.addf %213, %214 : vector<1x2xf32>
    %cst_130 = arith.constant dense<0xFF800000> : vector<1xf32>
    %216 = vector.multi_reduction <maximumf>, %215, %cst_130 [1] : vector<1x2xf32> to vector<1xf32>
    %217 = vector.shape_cast %216 : vector<1xf32> to vector<1x1xf32>
    %218 = vector.broadcast %217 : vector<1x1xf32> to vector<1x2xf32>
    %219 = arith.subf %215, %218 : vector<1x2xf32>
    %220 = math.exp %219 : vector<1x2xf32>
    %cst_131 = arith.constant dense<0.000000e+00> : vector<1xf32>
    %221 = vector.multi_reduction <add>, %220, %cst_131 [1] : vector<1x2xf32> to vector<1xf32>
    %222 = vector.shape_cast %221 : vector<1xf32> to vector<1x1xf32>
    %223 = tpu.reciprocal %222 {approx = true} : vector<1x1xf32> -> vector<1x1xf32>
    %224 = vector.broadcast %223 : vector<1x1xf32> to vector<1x2xf32>
    %225 = arith.mulf %220, %224 : vector<1x2xf32>
    %c0_132 = arith.constant 0 : index
    %c0_133 = arith.constant 0 : index
    %226 = vector.load %arg8[%c0_132, %c0_133] : memref<1x2xf32, #tpu.memory_space<vmem>>, vector<1x2xf32>
    tpu.vector_store %arg8[%c0_132, %c0_133], %225 {strides = array<i32>} : memref<1x2xf32, #tpu.memory_space<vmem>>, vector<1x2xf32>,
    %227 = vector.extract_strided_slice %225 {offsets = [0, 0], sizes = [1, 1], strides = [1, 1]} : vector<1x2xf32> to vector<1x1xf32>
    %228 = vector.extract_strided_slice %225 {offsets = [0, 1], sizes = [1, 1], strides = [1, 1]} : vector<1x2xf32> to vector<1x1xf32>
    %229 = arith.cmpf ogt, %228, %227 : vector<1x1xf32>
    %230 = arith.extui %229 : vector<1x1xi1> to vector<1x1xi32>
    %c0_134 = arith.constant 0 : index
    %c0_135 = arith.constant 0 : index
    %231 = vector.load %arg9[%c0_134, %c0_135] : memref<1x1xi32, #tpu.memory_space<vmem>>, vector<1x1xi32>
    tpu.vector_store %arg9[%c0_134, %c0_135], %230 {strides = array<i32>} : memref<1x1xi32, #tpu.memory_space<vmem>>, vector<1x1xi32>,
    %232 = arith.maximumf %227, %228 : vector<1x1xf32>
    %c0_136 = arith.constant 0 : index
    %c0_137 = arith.constant 0 : index
    %233 = vector.load %arg10[%c0_136, %c0_137] : memref<1x1xf32, #tpu.memory_space<vmem>>, vector<1x1xf32>
    tpu.vector_store %arg10[%c0_136, %c0_137], %232 {strides = array<i32>} : memref<1x1xf32, #tpu.memory_space<vmem>>, vector<1x1xf32>,
    return
  }
}

</mosaic_0001>

<bundles_post_ra>
// kernel: lstm_forward.1
= control target key start
LH: loop header
LB: loop body
LE: loop exit
PB: predicated region body
PF: predicated region fallthrough
CT: control target
= control target key end

     0   :  { %18 = vsyncpa [#allocation3], 0  ;;  %s3972_s0 = inlined_call_operand.vmem [shape: bf16[1,128], index: 0, kind: input, shape index: {}]   ;;  %s3973_s1 = inlined_call_operand.hbm [shape: bf16[4,128,512], index: 1, kind: input, shape index: {}]   ;;  %s3974_s2 = inlined_call_operand.hbm [shape: bf16[4,128,512], index: 2, kind: input, shape index: {}]   ;;  %s3975_s3 = inlined_call_operand.vmem [shape: f32[4,1,512], index: 3, kind: input, shape index: {}]   ;;  %s3976_s4 = inlined_call_operand.vmem [shape: f32[4,1,128], index: 4, kind: input, shape index: {}]   ;;  %s3977_s5 = inlined_call_operand.vmem [shape: f32[4,1,128], index: 5, kind: input, shape index: {}]   ;;  %s3978_s6 = inlined_call_operand.vmem [shape: f32[128,2], index: 6, kind: input, shape index: {}]   ;;  %s3979_s7 = inlined_call_operand.vmem [shape: f32[1,2], index: 7, kind: input, shape index: {}]   ;;  %s3980_s8 = inlined_call_operand.hbm [shape: f32[1,2], index: 8, kind: output, shape index: {0}]   ;;  %s3981_s9 = inlined_call_operand.hbm [shape: s32[1,1], index: 9, kind: output, shape index: {1}]   ;;  %s3982_s10 = inlined_call_operand.hbm [shape: f32[1,1], index: 10, kind: output, shape index: {2}]   ;;  %s3983_s11 = inlined_call_operand.hbm [shape: f32[4,1,128], index: 11, kind: output, shape index: {3}]   ;;  %s3984_s12 = inlined_call_operand.hbm [shape: f32[4,1,128], index: 12, kind: output, shape index: {4}]  }
   0x1   :  { %19 = vsyncpa [#allocation6], 0 }
   0x2   :  { %20 = vsyncpa [#allocation4], 0 }
   0x3   :  { %21 = vsyncpa [#allocation9], 0 }
   0x4   :  { %22 = vsyncpa [#allocation12], 0  ;;  %s3648_s21 = smov [#allocation2]   ;;  %s3484_s25 = scalar_lea.hbm %s3973_s1, 16384 }
   0x5   :  { %s30_s22 = sshll.u32 %s3648_s21, 4  ;;  %p3485_p0 = scmp.ne.s32.totalorder %s3973_s1, %s3484_s25  ;;  %s31_s22 = int_to_ptr.vmem [resolvable:$true] %s30_s22 }
   0x6   :  { %p3488_p1 = scmp.lt.u32.totalorder %s3484_s25, %s3973_s1 }
   0x8   :  { %p3490_p2 = pnand %p3488_p1, %p3485_p0 }
   0xa   :  { %3493 = shalt.err (!%p3490_p2)
}
   0xb   :  { %s3494_s30 = scalar_lea.vmem %s31_s22, 16384  ;;  %p3499_p4 = scmp.lt.s32.totalorder %s31_s22, %s31_s22 }
   0xc   :  { %p3495_p3 = scmp.ne.s32.totalorder %s31_s22, %s3494_s30  ;;  %p3500_p5 = scmp.lt.s32.totalorder %s3494_s30, %s3494_s30 }
   0xe   :  { %p3501_p6 = por %p3500_p5, %p3499_p4 }
  0x10   :  { %p3502_p7 = pnand %p3501_p6, %p3495_p3 }
  0x12   :  { %3505 = shalt.err (!%p3502_p7)
}
  0x13   :  { %s3649_s13 = smov 256   ;;  %s3650_s14 = smov 16  }
  0x14   :  { %36 = dma.hbm_to_vmem [thread:$0]  %s3973_s1, 16384, %s31_s22, [#allocation3], %s3649_s13, %s3649_s13, %s3650_s14  }
  0x15   :  { %s3651_s17 = smov [#allocation5]   ;;  %s3506_s21 = scalar_lea.hbm %s3974_s2, 16384 }
  0x16   :  { %s42_s18 = sshll.u32 %s3651_s17, 4  ;;  %p3507_p8 = scmp.ne.s32.totalorder %s3974_s2, %s3506_s21  ;;  %s43_s18 = int_to_ptr.vmem [resolvable:$true] %s42_s18 }
  0x17   :  { %p3510_p9 = scmp.lt.u32.totalorder %s3506_s21, %s3974_s2 }
  0x19   :  { %p3512_p10 = pnand %p3510_p9, %p3507_p8 }
  0x1b   :  { %3515 = shalt.err (!%p3512_p10)
}
  0x1c   :  { %s3516_s27 = scalar_lea.vmem %s43_s18, 16384  ;;  %p3521_p12 = scmp.lt.s32.totalorder %s43_s18, %s43_s18 }
  0x1d   :  { %p3517_p11 = scmp.ne.s32.totalorder %s43_s18, %s3516_s27  ;;  %p3522_p13 = scmp.lt.s32.totalorder %s3516_s27, %s3516_s27 }
  0x1f   :  { %p3523_p0 = por %p3522_p13, %p3521_p12 }
  0x21   :  { %p3524_p1 = pnand %p3523_p0, %p3517_p11 }
  0x23   :  { %3527 = shalt.err (!%p3524_p1)
}
  0x24   :  { %48 = dma.hbm_to_vmem [thread:$0]  %s3974_s2, 16384, %s43_s18, [#allocation6], %s3649_s13, %s3649_s13, %s3650_s14  }
  0x25   :  { %3638 = dma.done.wait [#allocation3], 16384  }
  0x26   :  { %3639 = vsyncadd [#allocation3], 4294950912 }
  0x27   :  { %3640 = dma.done.wait [#allocation6], 16384  }
  0x28   :  { %3641 = vsyncadd [#allocation6], 4294950912  ;;  %v3652_v0 = vmov 0   ;;  %v3056_v1 = vld [vmem:[#allocation5 + $0x4] ss:$16 sps:$4 sm:$0xff]   ;;  %vm3654_vm0 = vmmov 0  }
  0x29   :  { %314 = vmatprep.mubr.bf16.mxu0 %v3652_v0  ;;  %355 = vmatprep.mubr.bf16.mxu1 %v3652_v0  ;;  %v3058_v2 = vld [vmem:[#allocation5 + $0xc] ss:$16 sps:$4 sm:$0xff]   ;;  %v3060_v3 = vld [vmem:[#allocation5] ss:$16 sps:$4 sm:$0xff]   ;;  %v3061_v4 = vld [vmem:[#allocation5 + $0x8] ss:$16 sps:$4 sm:$0xff]  }
  0x2a   :  { %282 = vmatprep.subr.bf16.mxu0 %v3056_v1  ;;  %323 = vmatprep.subr.bf16.mxu1 %v3058_v2  ;;  %v3062_v5 = vld [vmem:[#allocation5 + $0x24] ss:$16 sps:$4 sm:$0xff]   ;;  %v3064_v6 = vld [vmem:[#allocation5 + $0x2c] ss:$16 sps:$4 sm:$0xff]   ;;  %v3066_v7 = vld [vmem:[#allocation5 + $0x20] ss:$16 sps:$4 sm:$0xff]  }
  0x2b   :  { %283 = vmatpush1.bf16.msra.mxu0 %v3060_v3  ;;  %324 = vmatpush1.bf16.msra.mxu1 %v3061_v4  ;;  %v3067_v8 = vld [vmem:[#allocation5 + $0x28] ss:$16 sps:$4 sm:$0xff]   ;;  %v3068_v9 = vld [vmem:[#allocation5 + $0x44] ss:$16 sps:$4 sm:$0xff]   ;;  %v3070_v10 = vld [vmem:[#allocation5 + $0x4c] ss:$16 sps:$4 sm:$0xff]  }
  0x2c   :  { %284 = vmatprep.subr.bf16.mxu0 %v3062_v5  ;;  %325 = vmatprep.subr.bf16.mxu1 %v3064_v6  ;;  %v3072_v11 = vld [vmem:[#allocation5 + $0x40] ss:$16 sps:$4 sm:$0xff]   ;;  %v3073_v12 = vld [vmem:[#allocation5 + $0x48] ss:$16 sps:$4 sm:$0xff]   ;;  %v3074_v13 = vld [vmem:[#allocation5 + $0x64] ss:$16 sps:$4 sm:$0xff]  }
  0x2d   :  { %v3076_v14 = vld [vmem:[#allocation5 + $0x6c] ss:$16 sps:$4 sm:$0xff]   ;;  %v3078_v15 = vld [vmem:[#allocation5 + $0x60] ss:$16 sps:$4 sm:$0xff]   ;;  %v3079_v16 = vld [vmem:[#allocation5 + $0x68] ss:$16 sps:$4 sm:$0xff]  }
  0x2e   :  { %v3080_v17 = vld [vmem:[#allocation5 + $0x84] ss:$16 sps:$4 sm:$0xff]   ;;  %v3082_v18 = vld [vmem:[#allocation5 + $0x8c] ss:$16 sps:$4 sm:$0xff]   ;;  %v3084_v19 = vld [vmem:[#allocation5 + $0x80] ss:$16 sps:$4 sm:$0xff]  }
  0x2f   :  { %285 = vmatpush1.bf16.msra.mxu0 %v3066_v7  ;;  %326 = vmatpush1.bf16.msra.mxu1 %v3067_v8  ;;  %v3085_v20 = vld [vmem:[#allocation5 + $0x88] ss:$16 sps:$4 sm:$0xff]   ;;  %v3086_v21 = vld [vmem:[#allocation5 + $0xa4] ss:$16 sps:$4 sm:$0xff]   ;;  %v3088_v22 = vld [vmem:[#allocation5 + $0xac] ss:$16 sps:$4 sm:$0xff]  }
  0x30   :  { %286 = vmatprep.subr.bf16.mxu0 %v3068_v9  ;;  %327 = vmatprep.subr.bf16.mxu1 %v3070_v10  ;;  %v3090_v23 = vld [vmem:[#allocation5 + $0xa0] ss:$16 sps:$4 sm:$0xff]   ;;  %v3091_v24 = vld [vmem:[#allocation5 + $0xa8] ss:$16 sps:$4 sm:$0xff]   ;;  %v3092_v25 = vld [vmem:[#allocation5 + $0xc4] ss:$16 sps:$4 sm:$0xff]  }
  0x31   :  { %v3094_v26 = vld [vmem:[#allocation5 + $0xcc] ss:$16 sps:$4 sm:$0xff]   ;;  %v3096_v27 = vld [vmem:[#allocation5 + $0xc0] ss:$16 sps:$4 sm:$0xff]   ;;  %v3097_v28 = vld [vmem:[#allocation5 + $0xc8] ss:$16 sps:$4 sm:$0xff]  }
  0x32   :  { %v3098_v29 = vld [vmem:[#allocation5 + $0xe4] ss:$16 sps:$4 sm:$0xff]   ;;  %v3100_v30 = vld [vmem:[#allocation5 + $0xec] ss:$16 sps:$4 sm:$0xff]   ;;  %v3102_v31 = vld [vmem:[#allocation5 + $0xe0] ss:$16 sps:$4 sm:$0xff]  }
  0x33   :  { %287 = vmatpush1.bf16.msra.mxu0 %v3072_v11  ;;  %328 = vmatpush1.bf16.msra.mxu1 %v3073_v12  ;;  %v3103_v32 = vld [vmem:[#allocation5 + $0xe8] ss:$16 sps:$4 sm:$0xff]   ;;  %v3106_v34 = vld [vmem:[#allocation5 + $0x104] ss:$16 sps:$4 sm:$0xff]   ;;  %v3109_v35 = vld [vmem:[#allocation5 + $0x10c] ss:$16 sps:$4 sm:$0xff]  }
  0x34   :  { %288 = vmatprep.subr.bf16.mxu0 %v3074_v13  ;;  %329 = vmatprep.subr.bf16.mxu1 %v3076_v14  ;;  %v66_v33 = vld [vmem:[%s3976_s4] sm:$0x1]  ;;  %v3104_v36 = vld [vmem:[#allocation5 + $0x100] ss:$16 sps:$4 sm:$0xff]   ;;  %v3112_v39 = vld [vmem:[#allocation5 + $0x124] ss:$16 sps:$4 sm:$0xff]  }
  0x35   :  { %v67_v37 = vpack.c.bf16 %v66_v33, %v66_v33  ;;  %v3107_v38 = vld [vmem:[#allocation5 + $0x108] ss:$16 sps:$4 sm:$0xff]   ;;  %v3115_v40 = vld [vmem:[#allocation5 + $0x12c] ss:$16 sps:$4 sm:$0xff]   ;;  %v3110_v41 = vld [vmem:[#allocation5 + $0x120] ss:$16 sps:$4 sm:$0xff]  }
  0x36   :  { %v3113_v42 = vld [vmem:[#allocation5 + $0x128] ss:$16 sps:$4 sm:$0xff]   ;;  %v3118_v43 = vld [vmem:[#allocation5 + $0x144] ss:$16 sps:$4 sm:$0xff]   ;;  %v3121_v44 = vld [vmem:[#allocation5 + $0x14c] ss:$16 sps:$4 sm:$0xff]  }
  0x37   :  { %289 = vmatpush1.bf16.msra.mxu0 %v3078_v15  ;;  %330 = vmatpush1.bf16.msra.mxu1 %v3079_v16  ;;  %v3116_v45 = vld [vmem:[#allocation5 + $0x140] ss:$16 sps:$4 sm:$0xff]   ;;  %v3119_v46 = vld [vmem:[#allocation5 + $0x148] ss:$16 sps:$4 sm:$0xff]   ;;  %v3124_v47 = vld [vmem:[#allocation5 + $0x164] ss:$16 sps:$4 sm:$0xff]  }
  0x38   :  { %290 = vmatprep.subr.bf16.mxu0 %v3080_v17  ;;  %331 = vmatprep.subr.bf16.mxu1 %v3082_v18  ;;  %v3127_v48 = vld [vmem:[#allocation5 + $0x16c] ss:$16 sps:$4 sm:$0xff]   ;;  %v3122_v49 = vld [vmem:[#allocation5 + $0x160] ss:$16 sps:$4 sm:$0xff]   ;;  %v3125_v50 = vld [vmem:[#allocation5 + $0x168] ss:$16 sps:$4 sm:$0xff]  }
  0x39   :  { %v3130_v51 = vld [vmem:[#allocation5 + $0x184] ss:$16 sps:$4 sm:$0xff]   ;;  %v3133_v52 = vld [vmem:[#allocation5 + $0x18c] ss:$16 sps:$4 sm:$0xff]   ;;  %v3128_v53 = vld [vmem:[#allocation5 + $0x180] ss:$16 sps:$4 sm:$0xff]  }
  0x3a   :  { %v3131_v54 = vld [vmem:[#allocation5 + $0x188] ss:$16 sps:$4 sm:$0xff]   ;;  %v3136_v55 = vld [vmem:[#allocation5 + $0x1a4] ss:$16 sps:$4 sm:$0xff]   ;;  %v3139_v56 = vld [vmem:[#allocation5 + $0x1ac] ss:$16 sps:$4 sm:$0xff]  }
  0x3b   :  { %291 = vmatpush1.bf16.msra.mxu0 %v3084_v19  ;;  %332 = vmatpush1.bf16.msra.mxu1 %v3085_v20  ;;  %v3134_v57 = vld [vmem:[#allocation5 + $0x1a0] ss:$16 sps:$4 sm:$0xff]   ;;  %v3137_v58 = vld [vmem:[#allocation5 + $0x1a8] ss:$16 sps:$4 sm:$0xff]   ;;  %v3142_v59 = vld [vmem:[#allocation5 + $0x1c4] ss:$16 sps:$4 sm:$0xff]  }
  0x3c   :  { %292 = vmatprep.subr.bf16.mxu0 %v3086_v21  ;;  %333 = vmatprep.subr.bf16.mxu1 %v3088_v22  ;;  %v3145_v60 = vld [vmem:[#allocation5 + $0x1cc] ss:$16 sps:$4 sm:$0xff]   ;;  %v3140_v61 = vld [vmem:[#allocation5 + $0x1c0] ss:$16 sps:$4 sm:$0xff]   ;;  %v3143_v62 = vld [vmem:[#allocation5 + $0x1c8] ss:$16 sps:$4 sm:$0xff]  }
  0x3d   :  { %v3148_v63 = vld [vmem:[#allocation5 + $0x1e4] ss:$16 sps:$4 sm:$0xff]   ;;  %v3151_v1 = vld [vmem:[#allocation5 + $0x1ec] ss:$16 sps:$4 sm:$0xff]   ;;  %v3146_v2 = vld [vmem:[#allocation5 + $0x1e0] ss:$16 sps:$4 sm:$0xff]  }
  0x3e   :  { %v3149_v3 = vld [vmem:[#allocation5 + $0x1e8] ss:$16 sps:$4 sm:$0xff]   ;;  %v3154_v5 = vld [vmem:[#allocation5 + $0x204] ss:$16 sps:$4 sm:$0xff]   ;;  %v3157_v6 = vld [vmem:[#allocation5 + $0x20c] ss:$16 sps:$4 sm:$0xff]  }
  0x3f   :  { %293 = vmatpush1.bf16.msra.mxu0 %v3090_v23  ;;  %334 = vmatpush1.bf16.msra.mxu1 %v3091_v24  ;;  %v2684_v4 = vld [vmem:[%s3976_s4 + $0x1] sm:$0x1]  ;;  %v3152_v8 = vld [vmem:[#allocation5 + $0x200] ss:$16 sps:$4 sm:$0xff]   ;;  %v3160_v10 = vld [vmem:[#allocation5 + $0x224] ss:$16 sps:$4 sm:$0xff]  }
  0x40   :  { %294 = vmatprep.subr.bf16.mxu0 %v3092_v25  ;;  %335 = vmatprep.subr.bf16.mxu1 %v3094_v26  ;;  %v366_v7 = vpack.c.bf16 %v2684_v4, %v2684_v4  ;;  %v3155_v9 = vld [vmem:[#allocation5 + $0x208] ss:$16 sps:$4 sm:$0xff]   ;;  %v3163_v11 = vld [vmem:[#allocation5 + $0x22c] ss:$16 sps:$4 sm:$0xff]   ;;  %v3158_v12 = vld [vmem:[#allocation5 + $0x220] ss:$16 sps:$4 sm:$0xff]  }
  0x41   :  { %v3161_v13 = vld [vmem:[#allocation5 + $0x228] ss:$16 sps:$4 sm:$0xff]   ;;  %v3166_v14 = vld [vmem:[#allocation5 + $0x244] ss:$16 sps:$4 sm:$0xff]   ;;  %v3169_v15 = vld [vmem:[#allocation5 + $0x24c] ss:$16 sps:$4 sm:$0xff]  }
  0x42   :  { %v3164_v16 = vld [vmem:[#allocation5 + $0x240] ss:$16 sps:$4 sm:$0xff]   ;;  %v3167_v17 = vld [vmem:[#allocation5 + $0x248] ss:$16 sps:$4 sm:$0xff]   ;;  %v3172_v18 = vld [vmem:[#allocation5 + $0x264] ss:$16 sps:$4 sm:$0xff]  }
  0x43   :  { %295 = vmatpush1.bf16.msra.mxu0 %v3096_v27  ;;  %336 = vmatpush1.bf16.msra.mxu1 %v3097_v28  ;;  %v3175_v19 = vld [vmem:[#allocation5 + $0x26c] ss:$16 sps:$4 sm:$0xff]   ;;  %v3170_v20 = vld [vmem:[#allocation5 + $0x260] ss:$16 sps:$4 sm:$0xff]   ;;  %v3173_v21 = vld [vmem:[#allocation5 + $0x268] ss:$16 sps:$4 sm:$0xff]  }
  0x44   :  { %296 = vmatprep.subr.bf16.mxu0 %v3098_v29  ;;  %337 = vmatprep.subr.bf16.mxu1 %v3100_v30  ;;  %v3178_v22 = vld [vmem:[#allocation5 + $0x284] ss:$16 sps:$4 sm:$0xff]   ;;  %v3181_v23 = vld [vmem:[#allocation5 + $0x28c] ss:$16 sps:$4 sm:$0xff]   ;;  %v3176_v24 = vld [vmem:[#allocation5 + $0x280] ss:$16 sps:$4 sm:$0xff]  }
  0x45   :  { %v3179_v25 = vld [vmem:[#allocation5 + $0x288] ss:$16 sps:$4 sm:$0xff]   ;;  %v3184_v26 = vld [vmem:[#allocation5 + $0x2a4] ss:$16 sps:$4 sm:$0xff]   ;;  %v3187_v27 = vld [vmem:[#allocation5 + $0x2ac] ss:$16 sps:$4 sm:$0xff]  }
  0x46   :  { %v3182_v28 = vld [vmem:[#allocation5 + $0x2a0] ss:$16 sps:$4 sm:$0xff]   ;;  %v3185_v29 = vld [vmem:[#allocation5 + $0x2a8] ss:$16 sps:$4 sm:$0xff]   ;;  %v3190_v30 = vld [vmem:[#allocation5 + $0x2c4] ss:$16 sps:$4 sm:$0xff]  }
  0x47   :  { %297 = vmatpush1.bf16.msra.mxu0 %v3102_v31  ;;  %338 = vmatpush1.bf16.msra.mxu1 %v3103_v32  ;;  %v3193_v31 = vld [vmem:[#allocation5 + $0x2cc] ss:$16 sps:$4 sm:$0xff]   ;;  %v3188_v32 = vld [vmem:[#allocation5 + $0x2c0] ss:$16 sps:$4 sm:$0xff]   ;;  %v3191_v33 = vld [vmem:[#allocation5 + $0x2c8] ss:$16 sps:$4 sm:$0xff]  }
  0x48   :  { %583 = vmatprep.subr.bf16.mxu0 %v3106_v34  ;;  %624 = vmatprep.subr.bf16.mxu1 %v3109_v35  ;;  %v3196_v34 = vld [vmem:[#allocation5 + $0x2e4] ss:$16 sps:$4 sm:$0xff]   ;;  %v3199_v35 = vld [vmem:[#allocation5 + $0x2ec] ss:$16 sps:$4 sm:$0xff]   ;;  %v3239_v4 = vld [vmem:[#allocation5 + $0x3c8] ss:$16 sps:$4 sm:$0xff]  }
  0x49   :  { %vm2550_vm1 = vcmask 8192   ;;  %s3658_s25 = smov [#allocation11]  }
  0x4a   :  { %315 = vmatmul.mubr.bf16.vlgmr.msra.gmra.mrb[0].mxu0 %v67_v37  ;;  %356 = vmatmul.mubr.bf16.vlgmr.msra.gmra.mrb[0].mxu1 %v67_v37  ;;  %v3197_v37 = vld [vmem:[#allocation5 + $0x2e8] ss:$16 sps:$4 sm:$0xff]   ;;  %s2613_s26 = sshll.u32 %s3658_s25, 4  ;;  %s2614_s26 = int_to_ptr.vmem [resolvable:$true] %s2613_s26 }
  0x4b   :  { %584 = vmatpush1.bf16.msra.mxu0 %v3104_v36  ;;  %625 = vmatpush1.bf16.msra.mxu1 %v3107_v38  ;;  %v3194_v36 = vld [vmem:[#allocation5 + $0x2e0] ss:$16 sps:$4 sm:$0xff]   ;;  %v3202_v38 = vld [vmem:[#allocation5 + $0x304] ss:$16 sps:$4 sm:$0xff]   ;;  %s3528_s27 = scalar_lea.vmem %s2614_s26, 64  ;;  %p3533_p3 = scmp.lt.s32.totalorder %s2614_s26, %s2614_s26 }
  0x4c   :  { %585 = vmatprep.subr.bf16.mxu0 %v3112_v39  ;;  %626 = vmatprep.subr.bf16.mxu1 %v3115_v40  ;;  %v2718_v39 = vld [vmem:[%s3976_s4 + $0x2] sm:$0x1]  ;;  %v3205_v40 = vld [vmem:[#allocation5 + $0x30c] ss:$16 sps:$4 sm:$0xff]   ;;  %p3529_p2 = scmp.ne.s32.totalorder %s2614_s26, %s3528_s27  ;;  %p3534_p4 = scmp.lt.s32.totalorder %s3528_s27, %s3528_s27 }
  0x4d   :  { %615 = vmatprep.mubr.bf16.mxu0 %v3652_v0  ;;  %656 = vmatprep.mubr.bf16.mxu1 %v3652_v0 }
  0x4e   :  { %p3535_p5 = por %p3534_p4, %p3533_p3 }
  0x4f   :  { %586 = vmatpush1.bf16.msra.mxu0 %v3110_v41  ;;  %627 = vmatpush1.bf16.msra.mxu1 %v3113_v42  ;;  %v3200_v41 = vld [vmem:[#allocation5 + $0x300] ss:$16 sps:$4 sm:$0xff]   ;;  %v3203_v42 = vld [vmem:[#allocation5 + $0x308] ss:$16 sps:$4 sm:$0xff]  }
  0x50   :  { %587 = vmatprep.subr.bf16.mxu0 %v3118_v43  ;;  %628 = vmatprep.subr.bf16.mxu1 %v3121_v44  ;;  %v667_v43 = vpack.c.bf16 %v2718_v39, %v2718_v39  ;;  %v3208_v44 = vld [vmem:[#allocation5 + $0x324] ss:$16 sps:$4 sm:$0xff]   ;;  %p3536_p6 = pnand %p3535_p5, %p3529_p2 }
  0x51   :  { %v3292_v39 = vld [vmem:[#allocation2 + $0xe4] ss:$16 sps:$4 sm:$0xff]  }
  0x53   :  { %588 = vmatpush1.bf16.msra.mxu0 %v3116_v45  ;;  %629 = vmatpush1.bf16.msra.mxu1 %v3119_v46  ;;  %v3211_v45 = vld [vmem:[#allocation5 + $0x32c] ss:$16 sps:$4 sm:$0xff]   ;;  %v3206_v46 = vld [vmem:[#allocation5 + $0x320] ss:$16 sps:$4 sm:$0xff]  }
  0x54   :  { %589 = vmatprep.subr.bf16.mxu0 %v3124_v47  ;;  %630 = vmatprep.subr.bf16.mxu1 %v3127_v48  ;;  %v3209_v47 = vld [vmem:[#allocation5 + $0x328] ss:$16 sps:$4 sm:$0xff]   ;;  %v3214_v48 = vld [vmem:[#allocation5 + $0x344] ss:$16 sps:$4 sm:$0xff]  }
  0x57   :  { %590 = vmatpush1.bf16.msra.mxu0 %v3122_v49  ;;  %631 = vmatpush1.bf16.msra.mxu1 %v3125_v50  ;;  %v3217_v49 = vld [vmem:[#allocation5 + $0x34c] ss:$16 sps:$4 sm:$0xff]   ;;  %v3212_v50 = vld [vmem:[#allocation5 + $0x340] ss:$16 sps:$4 sm:$0xff]  }
  0x58   :  { %591 = vmatprep.subr.bf16.mxu0 %v3130_v51  ;;  %632 = vmatprep.subr.bf16.mxu1 %v3133_v52  ;;  %v3215_v51 = vld [vmem:[#allocation5 + $0x348] ss:$16 sps:$4 sm:$0xff]   ;;  %v3220_v52 = vld [vmem:[#allocation5 + $0x364] ss:$16 sps:$4 sm:$0xff]  }
  0x5b   :  { %592 = vmatpush1.bf16.msra.mxu0 %v3128_v53  ;;  %633 = vmatpush1.bf16.msra.mxu1 %v3131_v54  ;;  %v3223_v53 = vld [vmem:[#allocation5 + $0x36c] ss:$16 sps:$4 sm:$0xff]   ;;  %v3218_v54 = vld [vmem:[#allocation5 + $0x360] ss:$16 sps:$4 sm:$0xff]  }
  0x5c   :  { %593 = vmatprep.subr.bf16.mxu0 %v3136_v55  ;;  %634 = vmatprep.subr.bf16.mxu1 %v3139_v56  ;;  %v3221_v55 = vld [vmem:[#allocation5 + $0x368] ss:$16 sps:$4 sm:$0xff]   ;;  %v3226_v56 = vld [vmem:[#allocation5 + $0x384] ss:$16 sps:$4 sm:$0xff]  }
  0x5f   :  { %594 = vmatpush1.bf16.msra.mxu0 %v3134_v57  ;;  %635 = vmatpush1.bf16.msra.mxu1 %v3137_v58  ;;  %v3229_v57 = vld [vmem:[#allocation5 + $0x38c] ss:$16 sps:$4 sm:$0xff]   ;;  %v3224_v58 = vld [vmem:[#allocation5 + $0x380] ss:$16 sps:$4 sm:$0xff]  }
  0x60   :  { %595 = vmatprep.subr.bf16.mxu0 %v3142_v59  ;;  %636 = vmatprep.subr.bf16.mxu1 %v3145_v60  ;;  %v3227_v59 = vld [vmem:[#allocation5 + $0x388] ss:$16 sps:$4 sm:$0xff]   ;;  %v3232_v60 = vld [vmem:[#allocation5 + $0x3a4] ss:$16 sps:$4 sm:$0xff]  }
  0x63   :  { %596 = vmatpush1.bf16.msra.mxu0 %v3140_v61  ;;  %637 = vmatpush1.bf16.msra.mxu1 %v3143_v62  ;;  %v3235_v61 = vld [vmem:[#allocation5 + $0x3ac] ss:$16 sps:$4 sm:$0xff]   ;;  %v3230_v62 = vld [vmem:[#allocation5 + $0x3a0] ss:$16 sps:$4 sm:$0xff]  }
  0x64   :  { %597 = vmatprep.subr.bf16.mxu0 %v3148_v63  ;;  %638 = vmatprep.subr.bf16.mxu1 %v3151_v1  ;;  %v3233_v63 = vld [vmem:[#allocation5 + $0x3a8] ss:$16 sps:$4 sm:$0xff]   ;;  %v3238_v1 = vld [vmem:[#allocation5 + $0x3c4] ss:$16 sps:$4 sm:$0xff]  }
  0x67   :  { %598 = vmatpush1.bf16.msra.mxu0 %v3146_v2  ;;  %639 = vmatpush1.bf16.msra.mxu1 %v3149_v3  ;;  %v3241_v2 = vld [vmem:[#allocation5 + $0x3cc] ss:$16 sps:$4 sm:$0xff]   ;;  %v3236_v3 = vld [vmem:[#allocation5 + $0x3c0] ss:$16 sps:$4 sm:$0xff]  }
  0x68   :  { %884 = vmatprep.subr.bf16.mxu0 %v3154_v5  ;;  %925 = vmatprep.subr.bf16.mxu1 %v3157_v6  ;;  %v3244_v5 = vld [vmem:[#allocation5 + $0x3e4] ss:$16 sps:$4 sm:$0xff]   ;;  %v3247_v6 = vld [vmem:[#allocation5 + $0x3ec] ss:$16 sps:$4 sm:$0xff]  }
  0x6a   :  { %616 = vmatmul.mubr.bf16.vlgmr.msra.gmra.mrb[4].mxu0 %v366_v7  ;;  %657 = vmatmul.mubr.bf16.vlgmr.msra.gmra.mrb[4].mxu1 %v366_v7  ;;  %v3242_v7 = vld [vmem:[#allocation5 + $0x3e0] ss:$16 sps:$4 sm:$0xff]  }
  0x6b   :  { %885 = vmatpush1.bf16.msra.mxu0 %v3152_v8  ;;  %926 = vmatpush1.bf16.msra.mxu1 %v3155_v9  ;;  %v3245_v8 = vld [vmem:[#allocation5 + $0x3e8] ss:$16 sps:$4 sm:$0xff]  }
  0x6c   :  { %886 = vmatprep.subr.bf16.mxu0 %v3160_v10  ;;  %927 = vmatprep.subr.bf16.mxu1 %v3163_v11  ;;  %v2752_v9 = vld [vmem:[%s3976_s4 + $0x3] sm:$0x1]  ;;  %v3250_v10 = vld [vmem:[#allocation2 + $0x4] ss:$16 sps:$4 sm:$0xff]   ;;  %v3253_v11 = vld [vmem:[#allocation2 + $0xc] ss:$16 sps:$4 sm:$0xff]  }
  0x6d   :  { %916 = vmatprep.mubr.bf16.mxu0 %v3652_v0  ;;  %957 = vmatprep.mubr.bf16.mxu1 %v3652_v0 }
  0x6f   :  { %887 = vmatpush1.bf16.msra.mxu0 %v3158_v12  ;;  %928 = vmatpush1.bf16.msra.mxu1 %v3161_v13  ;;  %v3248_v12 = vld [vmem:[#allocation2] ss:$16 sps:$4 sm:$0xff]   ;;  %v3251_v13 = vld [vmem:[#allocation2 + $0x8] ss:$16 sps:$4 sm:$0xff]  }
  0x70   :  { %888 = vmatprep.subr.bf16.mxu0 %v3166_v14  ;;  %929 = vmatprep.subr.bf16.mxu1 %v3169_v15  ;;  %v968_v14 = vpack.c.bf16 %v2752_v9, %v2752_v9  ;;  %v3256_v15 = vld [vmem:[#allocation2 + $0x24] ss:$16 sps:$4 sm:$0xff]  }
  0x71   :  { %v3340_v9 = vld [vmem:[#allocation2 + $0x1e4] ss:$16 sps:$4 sm:$0xff]  }
  0x73   :  { %889 = vmatpush1.bf16.msra.mxu0 %v3164_v16  ;;  %930 = vmatpush1.bf16.msra.mxu1 %v3167_v17  ;;  %v3259_v16 = vld [vmem:[#allocation2 + $0x2c] ss:$16 sps:$4 sm:$0xff]   ;;  %v3254_v17 = vld [vmem:[#allocation2 + $0x20] ss:$16 sps:$4 sm:$0xff]  }
  0x74   :  { %890 = vmatprep.subr.bf16.mxu0 %v3172_v18  ;;  %931 = vmatprep.subr.bf16.mxu1 %v3175_v19  ;;  %v3257_v18 = vld [vmem:[#allocation2 + $0x28] ss:$16 sps:$4 sm:$0xff]   ;;  %v3262_v19 = vld [vmem:[#allocation2 + $0x44] ss:$16 sps:$4 sm:$0xff]  }
  0x77   :  { %891 = vmatpush1.bf16.msra.mxu0 %v3170_v20  ;;  %932 = vmatpush1.bf16.msra.mxu1 %v3173_v21  ;;  %v3265_v20 = vld [vmem:[#allocation2 + $0x4c] ss:$16 sps:$4 sm:$0xff]   ;;  %v3260_v21 = vld [vmem:[#allocation2 + $0x40] ss:$16 sps:$4 sm:$0xff]  }
  0x78   :  { %892 = vmatprep.subr.bf16.mxu0 %v3178_v22  ;;  %933 = vmatprep.subr.bf16.mxu1 %v3181_v23  ;;  %v3263_v22 = vld [vmem:[#allocation2 + $0x48] ss:$16 sps:$4 sm:$0xff]   ;;  %v3268_v23 = vld [vmem:[#allocation2 + $0x64] ss:$16 sps:$4 sm:$0xff]  }
  0x7b   :  { %893 = vmatpush1.bf16.msra.mxu0 %v3176_v24  ;;  %934 = vmatpush1.bf16.msra.mxu1 %v3179_v25  ;;  %v3271_v24 = vld [vmem:[#allocation2 + $0x6c] ss:$16 sps:$4 sm:$0xff]   ;;  %v3266_v25 = vld [vmem:[#allocation2 + $0x60] ss:$16 sps:$4 sm:$0xff]  }
  0x7c   :  { %894 = vmatprep.subr.bf16.mxu0 %v3184_v26  ;;  %935 = vmatprep.subr.bf16.mxu1 %v3187_v27  ;;  %v3269_v26 = vld [vmem:[#allocation2 + $0x68] ss:$16 sps:$4 sm:$0xff]   ;;  %v3274_v27 = vld [vmem:[#allocation2 + $0x84] ss:$16 sps:$4 sm:$0xff]  }
  0x7f   :  { %895 = vmatpush1.bf16.msra.mxu0 %v3182_v28  ;;  %936 = vmatpush1.bf16.msra.mxu1 %v3185_v29  ;;  %v3277_v28 = vld [vmem:[#allocation2 + $0x8c] ss:$16 sps:$4 sm:$0xff]   ;;  %v3272_v29 = vld [vmem:[#allocation2 + $0x80] ss:$16 sps:$4 sm:$0xff]  }
  0x80   :  { %896 = vmatprep.subr.bf16.mxu0 %v3190_v30  ;;  %937 = vmatprep.subr.bf16.mxu1 %v3193_v31  ;;  %v3275_v30 = vld [vmem:[#allocation2 + $0x88] ss:$16 sps:$4 sm:$0xff]   ;;  %v3280_v31 = vld [vmem:[#allocation2 + $0xa4] ss:$16 sps:$4 sm:$0xff]  }
  0x83   :  { %897 = vmatpush1.bf16.msra.mxu0 %v3188_v32  ;;  %938 = vmatpush1.bf16.msra.mxu1 %v3191_v33  ;;  %v3283_v32 = vld [vmem:[#allocation2 + $0xac] ss:$16 sps:$4 sm:$0xff]   ;;  %v3278_v33 = vld [vmem:[#allocation2 + $0xa0] ss:$16 sps:$4 sm:$0xff]  }
  0x84   :  { %898 = vmatprep.subr.bf16.mxu0 %v3196_v34  ;;  %939 = vmatprep.subr.bf16.mxu1 %v3199_v35  ;;  %v3281_v34 = vld [vmem:[#allocation2 + $0xa8] ss:$16 sps:$4 sm:$0xff]   ;;  %v3286_v35 = vld [vmem:[#allocation2 + $0xc4] ss:$16 sps:$4 sm:$0xff]  }
  0x87   :  { %899 = vmatpush1.bf16.msra.mxu0 %v3194_v36  ;;  %940 = vmatpush1.bf16.msra.mxu1 %v3197_v37  ;;  %v3289_v36 = vld [vmem:[#allocation2 + $0xcc] ss:$16 sps:$4 sm:$0xff]   ;;  %v3284_v37 = vld [vmem:[#allocation2 + $0xc0] ss:$16 sps:$4 sm:$0xff]  }
  0x88   :  { %1185 = vmatprep.subr.bf16.mxu0 %v3202_v38  ;;  %1226 = vmatprep.subr.bf16.mxu1 %v3205_v40  ;;  %v3287_v38 = vld [vmem:[#allocation2 + $0xc8] ss:$16 sps:$4 sm:$0xff]   ;;  %v3295_v40 = vld [vmem:[#allocation2 + $0xec] ss:$16 sps:$4 sm:$0xff]  }
  0x8a   :  { %917 = vmatmul.mubr.bf16.vlgmr.msra.gmra.mrb[8].mxu0 %v667_v43  ;;  %958 = vmatmul.mubr.bf16.vlgmr.msra.gmra.mrb[8].mxu1 %v667_v43  ;;  %v1267_v43 = vld [vmem:[%s3972_s0] sm:$0x1] }
  0x8b   :  { %1186 = vmatpush1.bf16.msra.mxu0 %v3200_v41  ;;  %1227 = vmatpush1.bf16.msra.mxu1 %v3203_v42  ;;  %v3290_v41 = vld [vmem:[#allocation2 + $0xe0] ss:$16 sps:$4 sm:$0xff]   ;;  %v3293_v42 = vld [vmem:[#allocation2 + $0xe8] ss:$16 sps:$4 sm:$0xff]  }
  0x8c   :  { %1187 = vmatprep.subr.bf16.mxu0 %v3208_v44  ;;  %1228 = vmatprep.subr.bf16.mxu1 %v3211_v45  ;;  %v3298_v44 = vld [vmem:[#allocation2 + $0x104] ss:$16 sps:$4 sm:$0xff]   ;;  %v3301_v45 = vld [vmem:[#allocation2 + $0x10c] ss:$16 sps:$4 sm:$0xff]  }
  0x8d   :  { %1217 = vmatprep.mubr.bf16.mxu0 %v3652_v0  ;;  %1258 = vmatprep.mubr.bf16.mxu1 %v3652_v0 }
  0x8f   :  { %1188 = vmatpush1.bf16.msra.mxu0 %v3206_v46  ;;  %1229 = vmatpush1.bf16.msra.mxu1 %v3209_v47  ;;  %v3296_v46 = vld [vmem:[#allocation2 + $0x100] ss:$16 sps:$4 sm:$0xff]   ;;  %v3299_v47 = vld [vmem:[#allocation2 + $0x108] ss:$16 sps:$4 sm:$0xff]  }
  0x90   :  { %1189 = vmatprep.subr.bf16.mxu0 %v3214_v48  ;;  %1230 = vmatprep.subr.bf16.mxu1 %v3217_v49  ;;  %v3304_v48 = vld [vmem:[#allocation2 + $0x124] ss:$16 sps:$4 sm:$0xff]   ;;  %v3307_v49 = vld [vmem:[#allocation2 + $0x12c] ss:$16 sps:$4 sm:$0xff]  }
  0x93   :  { %1190 = vmatpush1.bf16.msra.mxu0 %v3212_v50  ;;  %1231 = vmatpush1.bf16.msra.mxu1 %v3215_v51  ;;  %v3302_v50 = vld [vmem:[#allocation2 + $0x120] ss:$16 sps:$4 sm:$0xff]   ;;  %v3305_v51 = vld [vmem:[#allocation2 + $0x128] ss:$16 sps:$4 sm:$0xff]  }
  0x94   :  { %1191 = vmatprep.subr.bf16.mxu0 %v3220_v52  ;;  %1232 = vmatprep.subr.bf16.mxu1 %v3223_v53  ;;  %v3310_v52 = vld [vmem:[#allocation2 + $0x144] ss:$16 sps:$4 sm:$0xff]   ;;  %v3313_v53 = vld [vmem:[#allocation2 + $0x14c] ss:$16 sps:$4 sm:$0xff]  }
  0x97   :  { %1192 = vmatpush1.bf16.msra.mxu0 %v3218_v54  ;;  %1233 = vmatpush1.bf16.msra.mxu1 %v3221_v55  ;;  %v3308_v54 = vld [vmem:[#allocation2 + $0x140] ss:$16 sps:$4 sm:$0xff]   ;;  %v3311_v55 = vld [vmem:[#allocation2 + $0x148] ss:$16 sps:$4 sm:$0xff]  }
  0x98   :  { %1193 = vmatprep.subr.bf16.mxu0 %v3226_v56  ;;  %1234 = vmatprep.subr.bf16.mxu1 %v3229_v57  ;;  %v3316_v56 = vld [vmem:[#allocation2 + $0x164] ss:$16 sps:$4 sm:$0xff]   ;;  %v3319_v57 = vld [vmem:[#allocation2 + $0x16c] ss:$16 sps:$4 sm:$0xff]  }
  0x9b   :  { %1194 = vmatpush1.bf16.msra.mxu0 %v3224_v58  ;;  %1235 = vmatpush1.bf16.msra.mxu1 %v3227_v59  ;;  %v3314_v58 = vld [vmem:[#allocation2 + $0x160] ss:$16 sps:$4 sm:$0xff]   ;;  %v3317_v59 = vld [vmem:[#allocation2 + $0x168] ss:$16 sps:$4 sm:$0xff]  }
  0x9c   :  { %1195 = vmatprep.subr.bf16.mxu0 %v3232_v60  ;;  %1236 = vmatprep.subr.bf16.mxu1 %v3235_v61  ;;  %v3322_v60 = vld [vmem:[#allocation2 + $0x184] ss:$16 sps:$4 sm:$0xff]   ;;  %v3325_v61 = vld [vmem:[#allocation2 + $0x18c] ss:$16 sps:$4 sm:$0xff]  }
  0x9f   :  { %1196 = vmatpush1.bf16.msra.mxu0 %v3230_v62  ;;  %1237 = vmatpush1.bf16.msra.mxu1 %v3233_v63  ;;  %v3320_v62 = vld [vmem:[#allocation2 + $0x180] ss:$16 sps:$4 sm:$0xff]   ;;  %v3323_v63 = vld [vmem:[#allocation2 + $0x188] ss:$16 sps:$4 sm:$0xff]  }
  0xa0   :  { %1197 = vmatprep.subr.bf16.mxu0 %v3238_v1  ;;  %1238 = vmatprep.subr.bf16.mxu1 %v3241_v2  ;;  %v3328_v1 = vld [vmem:[#allocation2 + $0x1a4] ss:$16 sps:$4 sm:$0xff]   ;;  %v3331_v2 = vld [vmem:[#allocation2 + $0x1ac] ss:$16 sps:$4 sm:$0xff]  }
  0xa3   :  { %1198 = vmatpush1.bf16.msra.mxu0 %v3236_v3  ;;  %1239 = vmatpush1.bf16.msra.mxu1 %v3239_v4  ;;  %v3326_v3 = vld [vmem:[#allocation2 + $0x1a0] ss:$16 sps:$4 sm:$0xff]   ;;  %v3329_v4 = vld [vmem:[#allocation2 + $0x1a8] ss:$16 sps:$4 sm:$0xff]  }
  0xa4   :  { %1199 = vmatprep.subr.bf16.mxu0 %v3244_v5  ;;  %1240 = vmatprep.subr.bf16.mxu1 %v3247_v6  ;;  %v3334_v5 = vld [vmem:[#allocation2 + $0x1c4] ss:$16 sps:$4 sm:$0xff]   ;;  %v3337_v6 = vld [vmem:[#allocation2 + $0x1cc] ss:$16 sps:$4 sm:$0xff]  }
  0xa7   :  { %1200 = vmatpush1.bf16.msra.mxu0 %v3242_v7  ;;  %1241 = vmatpush1.bf16.msra.mxu1 %v3245_v8  ;;  %v3332_v7 = vld [vmem:[#allocation2 + $0x1c0] ss:$16 sps:$4 sm:$0xff]   ;;  %v3335_v8 = vld [vmem:[#allocation2 + $0x1c8] ss:$16 sps:$4 sm:$0xff]  }
  0xa8   :  { %1460 = vmatprep.subr.bf16.mxu0 %v3250_v10  ;;  %1501 = vmatprep.subr.bf16.mxu1 %v3253_v11  ;;  %v3343_v10 = vld [vmem:[#allocation2 + $0x1ec] ss:$16 sps:$4 sm:$0xff]   ;;  %v3338_v11 = vld [vmem:[#allocation2 + $0x1e0] ss:$16 sps:$4 sm:$0xff]  }
  0xaa   :  { %1218 = vmatmul.mubr.bf16.vlgmr.msra.gmra.mrb[12].mxu0 %v968_v14  ;;  %1259 = vmatmul.mubr.bf16.vlgmr.msra.gmra.mrb[12].mxu1 %v968_v14 }
  0xab   :  { %1461 = vmatpush1.bf16.msra.mxu0 %v3248_v12  ;;  %1502 = vmatpush1.bf16.msra.mxu1 %v3251_v13  ;;  %v3341_v12 = vld [vmem:[#allocation2 + $0x1e8] ss:$16 sps:$4 sm:$0xff]   ;;  %v262_v13 = vlaneseq }
  0xac   :  { %1462 = vmatprep.subr.bf16.mxu0 %v3256_v15  ;;  %1503 = vmatprep.subr.bf16.mxu1 %v3259_v16  ;;  %v100_v16 = vld [vmem:[%s3975_s3] sm:$0xf] }
  0xad   :  { %1492 = vmatprep.mubr.bf16.mxu0 %v3652_v0  ;;  %1533 = vmatprep.mubr.bf16.mxu1 %v3652_v0  ;;  %v263_v14 = vshrl.u32 %v262_v13, 7  ;;  %v3376_v13 = vld [vmem:[#allocation2 + $0x2a4] ss:$16 sps:$4 sm:$0xff]  }
  0xaf   :  { %1463 = vmatpush1.bf16.msra.mxu0 %v3254_v17  ;;  %1504 = vmatpush1.bf16.msra.mxu1 %v3257_v18  ;;  %v3781_v15 = vsub.s32 0, %v263_v14  ;;  %v3786_v17 = vsub.s32 1, %v263_v14 }
  0xb0   :  { %1464 = vmatprep.subr.bf16.mxu0 %v3262_v19  ;;  %1505 = vmatprep.subr.bf16.mxu1 %v3265_v20  ;;  %v3789_v19 = vsub.s32 2, %v263_v14 }
  0xb1   :  { %v265_v18 = vrot.slane %v100_v16, %v3781_v15  ;;  %v269_v20 = vrot.slane %v100_v16, %v3786_v17 }
  0xb3   :  { %1465 = vmatpush1.bf16.msra.mxu0 %v3260_v21  ;;  %1506 = vmatpush1.bf16.msra.mxu1 %v3263_v22 }
  0xb4   :  { %1466 = vmatprep.subr.bf16.mxu0 %v3268_v23  ;;  %1507 = vmatprep.subr.bf16.mxu1 %v3271_v24  ;;  %v273_v24 = vrot.slane %v100_v16, %v3789_v19 }
  0xb7   :  { %1467 = vmatpush1.bf16.msra.mxu0 %v3266_v25  ;;  %1508 = vmatpush1.bf16.msra.mxu1 %v3269_v26  ;;  %v3793_v26 = vsub.s32 3, %v263_v14  ;;  %v3379_v14 = vld [vmem:[#allocation2 + $0x2ac] ss:$16 sps:$4 sm:$0xff]  }
  0xb8   :  { %1468 = vmatprep.subr.bf16.mxu0 %v3274_v27  ;;  %1509 = vmatprep.subr.bf16.mxu1 %v3277_v28 }
  0xbb   :  { %1469 = vmatpush1.bf16.msra.mxu0 %v3272_v29  ;;  %1510 = vmatpush1.bf16.msra.mxu1 %v3275_v30 }
  0xbc   :  { %1470 = vmatprep.subr.bf16.mxu0 %v3280_v31  ;;  %1511 = vmatprep.subr.bf16.mxu1 %v3283_v32 }
  0xbf   :  { %1471 = vmatpush1.bf16.msra.mxu0 %v3278_v33  ;;  %1512 = vmatpush1.bf16.msra.mxu1 %v3281_v34 }
  0xc0   :  { %1472 = vmatprep.subr.bf16.mxu0 %v3286_v35  ;;  %1513 = vmatprep.subr.bf16.mxu1 %v3289_v36  ;;  %v277_v36 = vrot.slane %v100_v16, %v3793_v26  ;;  %v3374_v16 = vld [vmem:[#allocation2 + $0x2a0] ss:$16 sps:$4 sm:$0xff]  }
  0xc3   :  { %1473 = vmatpush1.bf16.msra.mxu0 %v3284_v37  ;;  %1514 = vmatpush1.bf16.msra.mxu1 %v3287_v38 }
  0xc4   :  { %1474 = vmatprep.subr.bf16.mxu0 %v3292_v39  ;;  %1515 = vmatprep.subr.bf16.mxu1 %v3295_v40 }
  0xc7   :  { %1475 = vmatpush1.bf16.msra.mxu0 %v3290_v41  ;;  %1516 = vmatpush1.bf16.msra.mxu1 %v3293_v42 }
  0xc8   :  { %1757 = vmatprep.subr.bf16.mxu0 %v3298_v44  ;;  %1798 = vmatprep.subr.bf16.mxu1 %v3301_v45  ;;  %v1555_v44 = vld [vmem:[%s3977_s5] sm:$0x1] }
  0xca   :  { %1493 = vmatmul.mubr.bf16.vlgmr.msra.gmra.mrb[0].mxu0 %v1267_v43  ;;  %1534 = vmatmul.mubr.bf16.vlgmr.msra.gmra.mrb[0].mxu1 %v1267_v43 }
  0xcb   :  { %1789 = vmatprep.mubr.bf16.mxu0 %v3652_v0  ;;  %1830 = vmatprep.mubr.bf16.mxu1 %v3652_v0 }
  0xcc   :  { %1758 = vmatpush1.bf16.msra.mxu0 %v3296_v46  ;;  %1799 = vmatpush1.bf16.msra.mxu1 %v3299_v47 }
  0xcd   :  { %1759 = vmatprep.subr.bf16.mxu0 %v3304_v48  ;;  %1800 = vmatprep.subr.bf16.mxu1 %v3307_v49 }
  0xd0   :  { %1760 = vmatpush1.bf16.msra.mxu0 %v3302_v50  ;;  %1801 = vmatpush1.bf16.msra.mxu1 %v3305_v51 }
  0xd1   :  { %1761 = vmatprep.subr.bf16.mxu0 %v3310_v52  ;;  %1802 = vmatprep.subr.bf16.mxu1 %v3313_v53 }
  0xd4   :  { %1762 = vmatpush1.bf16.msra.mxu0 %v3308_v54  ;;  %1803 = vmatpush1.bf16.msra.mxu1 %v3311_v55 }
  0xd5   :  { %1763 = vmatprep.subr.bf16.mxu0 %v3316_v56  ;;  %1804 = vmatprep.subr.bf16.mxu1 %v3319_v57  ;;  %v3346_v56 = vld [vmem:[#allocation2 + $0x204] ss:$16 sps:$4 sm:$0xff]   ;;  %v3349_v57 = vld [vmem:[#allocation2 + $0x20c] ss:$16 sps:$4 sm:$0xff]  }
  0xd8   :  { %1764 = vmatpush1.bf16.msra.mxu0 %v3314_v58  ;;  %1805 = vmatpush1.bf16.msra.mxu1 %v3317_v59  ;;  %v3344_v58 = vld [vmem:[#allocation2 + $0x200] ss:$16 sps:$4 sm:$0xff]   ;;  %v3347_v59 = vld [vmem:[#allocation2 + $0x208] ss:$16 sps:$4 sm:$0xff]  }
  0xd9   :  { %1765 = vmatprep.subr.bf16.mxu0 %v3322_v60  ;;  %1806 = vmatprep.subr.bf16.mxu1 %v3325_v61  ;;  %v3352_v60 = vld [vmem:[#allocation2 + $0x224] ss:$16 sps:$4 sm:$0xff]   ;;  %v3355_v61 = vld [vmem:[#allocation2 + $0x22c] ss:$16 sps:$4 sm:$0xff]  }
  0xdc   :  { %1766 = vmatpush1.bf16.msra.mxu0 %v3320_v62  ;;  %1807 = vmatpush1.bf16.msra.mxu1 %v3323_v63  ;;  %v3350_v62 = vld [vmem:[#allocation2 + $0x220] ss:$16 sps:$4 sm:$0xff]   ;;  %v3353_v63 = vld [vmem:[#allocation2 + $0x228] ss:$16 sps:$4 sm:$0xff]  }
  0xdd   :  { %1767 = vmatprep.subr.bf16.mxu0 %v3328_v1  ;;  %1808 = vmatprep.subr.bf16.mxu1 %v3331_v2  ;;  %v3358_v1 = vld [vmem:[#allocation2 + $0x244] ss:$16 sps:$4 sm:$0xff]   ;;  %v3361_v2 = vld [vmem:[#allocation2 + $0x24c] ss:$16 sps:$4 sm:$0xff]  }
  0xe0   :  { %1768 = vmatpush1.bf16.msra.mxu0 %v3326_v3  ;;  %1809 = vmatpush1.bf16.msra.mxu1 %v3329_v4  ;;  %v3356_v3 = vld [vmem:[#allocation2 + $0x240] ss:$16 sps:$4 sm:$0xff]   ;;  %v3359_v4 = vld [vmem:[#allocation2 + $0x248] ss:$16 sps:$4 sm:$0xff]  }
  0xe1   :  { %1769 = vmatprep.subr.bf16.mxu0 %v3334_v5  ;;  %1810 = vmatprep.subr.bf16.mxu1 %v3337_v6  ;;  %v3364_v5 = vld [vmem:[#allocation2 + $0x264] ss:$16 sps:$4 sm:$0xff]   ;;  %v3367_v6 = vld [vmem:[#allocation2 + $0x26c] ss:$16 sps:$4 sm:$0xff]  }
  0xe4   :  { %1770 = vmatpush1.bf16.msra.mxu0 %v3332_v7  ;;  %1811 = vmatpush1.bf16.msra.mxu1 %v3335_v8  ;;  %v3362_v7 = vld [vmem:[#allocation2 + $0x260] ss:$16 sps:$4 sm:$0xff]   ;;  %v3365_v8 = vld [vmem:[#allocation2 + $0x268] ss:$16 sps:$4 sm:$0xff]  }
  0xe5   :  { %1771 = vmatprep.subr.bf16.mxu0 %v3340_v9  ;;  %1812 = vmatprep.subr.bf16.mxu1 %v3343_v10  ;;  %v3370_v9 = vld [vmem:[#allocation2 + $0x284] ss:$16 sps:$4 sm:$0xff]   ;;  %v3373_v10 = vld [vmem:[#allocation2 + $0x28c] ss:$16 sps:$4 sm:$0xff]  }
  0xe8   :  { %1772 = vmatpush1.bf16.msra.mxu0 %v3338_v11  ;;  %1813 = vmatpush1.bf16.msra.mxu1 %v3341_v12  ;;  %v3368_v11 = vld [vmem:[#allocation2 + $0x280] ss:$16 sps:$4 sm:$0xff]   ;;  %v3371_v12 = vld [vmem:[#allocation2 + $0x288] ss:$16 sps:$4 sm:$0xff]  }
  0xe9   :  { %2057 = vmatprep.subr.bf16.mxu0 %v3346_v56  ;;  %2098 = vmatprep.subr.bf16.mxu1 %v3349_v57 }
 0x19d   :  { %v1494_v21 = vpop.f32.mrb[0].mxu0  ;;  %v1535_v22 = vpop.f32.mrb[0].mxu1 }
 0x19e   :  { %v2993_v23 = vadd.f32 %v1494_v21, %v265_v18  ;;  %v1496_v25 = vpop.f32.mrb[1].mxu0  ;;  %v1537_v27 = vpop.f32.mrb[1].mxu1  ;;  %v2995_v35 = vadd.f32 %v1535_v22, %v273_v24  ;;  %v3377_v18 = vld [vmem:[#allocation2 + $0x2a8] ss:$16 sps:$4 sm:$0xff]   ;;  %v3385_v21 = vld [vmem:[#allocation2 + $0x2cc] ss:$16 sps:$4 sm:$0xff]  }
 0x19f   :  { %v2994_v28 = vadd.f32 %v1496_v25, %v269_v20  ;;  %v1498_v29 = vpop.f32.mrb[2].mxu0  ;;  %v1539_v30 = vpop.f32.mrb[2].mxu1  ;;  %v2996_v37 = vadd.f32 %v1537_v27, %v277_v36  ;;  %v3382_v20 = vld [vmem:[#allocation2 + $0x2c4] ss:$16 sps:$4 sm:$0xff]   ;;  %v3380_v22 = vld [vmem:[#allocation2 + $0x2c0] ss:$16 sps:$4 sm:$0xff]  }
 0x1a0   :  { %v1542_v31 = vmul.f32 0.5, %v2993_v23  ;;  %v1499_v32 = vpop.f32.mrb[3].mxu0  ;;  %v1540_v33 = vpop.f32.mrb[3].mxu1  ;;  %v3383_v23 = vld [vmem:[#allocation2 + $0x2c8] ss:$16 sps:$4 sm:$0xff]  }
 0x1a1   :  { %v1546_v34 = vmul.f32 0.5, %v2994_v28  ;;  %v1551_v38 = vmul.f32 0.5, %v2996_v37  ;;  %v3388_v24 = vld [vmem:[#allocation2 + $0x2e4] ss:$16 sps:$4 sm:$0xff]   ;;  %v3391_v25 = vld [vmem:[#allocation2 + $0x2ec] ss:$16 sps:$4 sm:$0xff]  }
 0x1a2   :  { %3440 = vtanh.f32 %v1542_v31  ;;  %v3386_v27 = vld [vmem:[#allocation2 + $0x2e0] ss:$16 sps:$4 sm:$0xff]   ;;  %v3389_v28 = vld [vmem:[#allocation2 + $0x2e8] ss:$16 sps:$4 sm:$0xff]   ;;  %v2685_v29 = vld [vmem:[%s3975_s3 + $0x4] sm:$0xf] }
 0x1a3   :  { %3442 = vtanh.f32 %v1546_v34  ;;  %v566_v30 = vrot.slane %v2685_v29, %v3781_v15  ;;  %v570_v31 = vrot.slane %v2685_v29, %v3786_v17 }
 0x1a4   :  { %3444 = vtanh.f32 %v2995_v35  ;;  %v574_v35 = vrot.slane %v2685_v29, %v3789_v19 }
 0x1a5   :  { %3446 = vtanh.f32 %v1551_v38 }
 0x1ac   :  { %v3441_v39 = vpop.eup %3440 }
 0x1ad   :  { %v3443_v40 = vpop.eup %3442  ;;  %v1544_v41 = vadd.f32 1.0, %v3441_v39 }
 0x1ae   :  { %v1548_v42 = vadd.f32 1.0, %v3443_v40  ;;  %v3445_v45 = vpop.eup %3444 }
 0x1af   :  { %v1545_v43 = vmul.f32 0.5, %v1544_v41  ;;  %v3447_v50 = vpop.eup %3446 }
 0x1b0   :  { %v1549_v46 = vmul.f32 0.5, %v1548_v42  ;;  %v1553_v51 = vadd.f32 1.0, %v3447_v50 }
 0x1b1   :  { %v1557_v47 = vmul.f32 %v3445_v45, %v1545_v43 }
 0x1b2   :  { %v1556_v48 = vmul.f32 %v1555_v44, %v1549_v46  ;;  %v1554_v52 = vmul.f32 0.5, %v1553_v51  ;;  %v578_v46 = vrot.slane %v2685_v29, %v3793_v26  ;;  %v3422_v29 = vld [vmem:[#allocation2 + $0x3a0] ss:$16 sps:$4 sm:$0xff]  }
 0x1b4   :  { %v1558_v49 = vadd.f32 %v1557_v47, %v1556_v48 }
 0x1b6   :  { %3448 = vtanh.f32 %v1558_v49  ;;  %1562 = vst [vmem:[#allocation13] sm:$0x1] %v1558_v49 }
 0x1c0   :  { %v3449_v53 = vpop.eup %3448 }
 0x1c1   :  { %v1560_v54 = vmul.f32 %v3449_v53, %v1554_v52 }
 0x1c3   :  { %1561 = vst [vmem:[#allocation11] sm:$0x1] %v1560_v54  ;;  %v1563_v55 = vpack.c.bf16 %v1560_v54, %v1560_v54  ;;  %v2850_v54 = vld [vmem:[%s3977_s5 + $0x1] sm:$0x1] }
 0x1c5   :  { %1790 = vmatmul.mubr.bf16.vlgmr.msra.gmra.mrb[4].mxu0 %v1563_v55  ;;  %1831 = vmatmul.mubr.bf16.vlgmr.msra.gmra.mrb[4].mxu1 %v1563_v55 }
 0x1c6   :  { %2089 = vmatprep.mubr.bf16.mxu0 %v3652_v0  ;;  %2130 = vmatprep.mubr.bf16.mxu1 %v3652_v0 }
 0x1c7   :  { %2058 = vmatpush1.bf16.msra.mxu0 %v3344_v58  ;;  %2099 = vmatpush1.bf16.msra.mxu1 %v3347_v59 }
 0x1c8   :  { %2059 = vmatprep.subr.bf16.mxu0 %v3352_v60  ;;  %2100 = vmatprep.subr.bf16.mxu1 %v3355_v61 }
 0x1cb   :  { %2060 = vmatpush1.bf16.msra.mxu0 %v3350_v62  ;;  %2101 = vmatpush1.bf16.msra.mxu1 %v3353_v63 }
 0x1cc   :  { %2061 = vmatprep.subr.bf16.mxu0 %v3358_v1  ;;  %2102 = vmatprep.subr.bf16.mxu1 %v3361_v2 }
 0x1cf   :  { %2062 = vmatpush1.bf16.msra.mxu0 %v3356_v3  ;;  %2103 = vmatpush1.bf16.msra.mxu1 %v3359_v4  ;;  %v3394_v3 = vld [vmem:[#allocation2 + $0x304] ss:$16 sps:$4 sm:$0xff]   ;;  %v3397_v4 = vld [vmem:[#allocation2 + $0x30c] ss:$16 sps:$4 sm:$0xff]  }
 0x1d0   :  { %2063 = vmatprep.subr.bf16.mxu0 %v3364_v5  ;;  %2104 = vmatprep.subr.bf16.mxu1 %v3367_v6  ;;  %v3392_v5 = vld [vmem:[#allocation2 + $0x300] ss:$16 sps:$4 sm:$0xff]   ;;  %v3395_v6 = vld [vmem:[#allocation2 + $0x308] ss:$16 sps:$4 sm:$0xff]  }
 0x1d3   :  { %2064 = vmatpush1.bf16.msra.mxu0 %v3362_v7  ;;  %2105 = vmatpush1.bf16.msra.mxu1 %v3365_v8  ;;  %v3400_v7 = vld [vmem:[#allocation2 + $0x324] ss:$16 sps:$4 sm:$0xff]   ;;  %v3403_v8 = vld [vmem:[#allocation2 + $0x32c] ss:$16 sps:$4 sm:$0xff]  }
 0x1d4   :  { %2065 = vmatprep.subr.bf16.mxu0 %v3370_v9  ;;  %2106 = vmatprep.subr.bf16.mxu1 %v3373_v10  ;;  %v3398_v9 = vld [vmem:[#allocation2 + $0x320] ss:$16 sps:$4 sm:$0xff]   ;;  %v3401_v10 = vld [vmem:[#allocation2 + $0x328] ss:$16 sps:$4 sm:$0xff]  }
 0x1d7   :  { %2066 = vmatpush1.bf16.msra.mxu0 %v3368_v11  ;;  %2107 = vmatpush1.bf16.msra.mxu1 %v3371_v12  ;;  %v3406_v11 = vld [vmem:[#allocation2 + $0x344] ss:$16 sps:$4 sm:$0xff]   ;;  %v3409_v12 = vld [vmem:[#allocation2 + $0x34c] ss:$16 sps:$4 sm:$0xff]  }
 0x1d8   :  { %2067 = vmatprep.subr.bf16.mxu0 %v3376_v13  ;;  %2108 = vmatprep.subr.bf16.mxu1 %v3379_v14  ;;  %v3404_v13 = vld [vmem:[#allocation2 + $0x340] ss:$16 sps:$4 sm:$0xff]   ;;  %v3407_v14 = vld [vmem:[#allocation2 + $0x348] ss:$16 sps:$4 sm:$0xff]  }
 0x1db   :  { %2068 = vmatpush1.bf16.msra.mxu0 %v3374_v16  ;;  %2109 = vmatpush1.bf16.msra.mxu1 %v3377_v18  ;;  %v3412_v16 = vld [vmem:[#allocation2 + $0x364] ss:$16 sps:$4 sm:$0xff]   ;;  %v3415_v18 = vld [vmem:[#allocation2 + $0x36c] ss:$16 sps:$4 sm:$0xff]  }
 0x1dc   :  { %2069 = vmatprep.subr.bf16.mxu0 %v3382_v20  ;;  %2110 = vmatprep.subr.bf16.mxu1 %v3385_v21  ;;  %v3410_v20 = vld [vmem:[#allocation2 + $0x360] ss:$16 sps:$4 sm:$0xff]   ;;  %v3413_v21 = vld [vmem:[#allocation2 + $0x368] ss:$16 sps:$4 sm:$0xff]  }
 0x1df   :  { %2070 = vmatpush1.bf16.msra.mxu0 %v3380_v22  ;;  %2111 = vmatpush1.bf16.msra.mxu1 %v3383_v23  ;;  %v3418_v22 = vld [vmem:[#allocation2 + $0x384] ss:$16 sps:$4 sm:$0xff]   ;;  %v3421_v23 = vld [vmem:[#allocation2 + $0x38c] ss:$16 sps:$4 sm:$0xff]  }
 0x1e0   :  { %2071 = vmatprep.subr.bf16.mxu0 %v3388_v24  ;;  %2112 = vmatprep.subr.bf16.mxu1 %v3391_v25  ;;  %v3416_v24 = vld [vmem:[#allocation2 + $0x380] ss:$16 sps:$4 sm:$0xff]   ;;  %v3419_v25 = vld [vmem:[#allocation2 + $0x388] ss:$16 sps:$4 sm:$0xff]  }
 0x1e3   :  { %2072 = vmatpush1.bf16.msra.mxu0 %v3386_v27  ;;  %2113 = vmatpush1.bf16.msra.mxu1 %v3389_v28  ;;  %v3424_v27 = vld [vmem:[#allocation2 + $0x3a4] ss:$16 sps:$4 sm:$0xff]   ;;  %v3427_v28 = vld [vmem:[#allocation2 + $0x3ac] ss:$16 sps:$4 sm:$0xff]  }
 0x1e4   :  { %2357 = vmatprep.subr.bf16.mxu0 %v3394_v3  ;;  %2398 = vmatprep.subr.bf16.mxu1 %v3397_v4 }
 0x298   :  { %v1791_v32 = vpop.f32.mrb[4].mxu0  ;;  %v1832_v33 = vpop.f32.mrb[4].mxu1 }
 0x299   :  { %v2997_v34 = vadd.f32 %v1791_v32, %v566_v30  ;;  %v1793_v36 = vpop.f32.mrb[5].mxu0  ;;  %v1834_v37 = vpop.f32.mrb[5].mxu1  ;;  %v2999_v45 = vadd.f32 %v1832_v33, %v574_v35  ;;  %v3425_v30 = vld [vmem:[#allocation2 + $0x3a8] ss:$16 sps:$4 sm:$0xff]   ;;  %v3433_v32 = vld [vmem:[#allocation2 + $0x3cc] ss:$16 sps:$4 sm:$0xff]  }
 0x29a   :  { %v2998_v38 = vadd.f32 %v1793_v36, %v570_v31  ;;  %v1795_v39 = vpop.f32.mrb[6].mxu0  ;;  %v1836_v40 = vpop.f32.mrb[6].mxu1  ;;  %v3000_v47 = vadd.f32 %v1834_v37, %v578_v46  ;;  %v3430_v31 = vld [vmem:[#allocation2 + $0x3c4] ss:$16 sps:$4 sm:$0xff]   ;;  %v3428_v33 = vld [vmem:[#allocation2 + $0x3c0] ss:$16 sps:$4 sm:$0xff]  }
 0x29b   :  { %v1839_v41 = vmul.f32 0.5, %v2997_v34  ;;  %v1796_v42 = vpop.f32.mrb[7].mxu0  ;;  %v1837_v43 = vpop.f32.mrb[7].mxu1  ;;  %v3431_v34 = vld [vmem:[#allocation2 + $0x3c8] ss:$16 sps:$4 sm:$0xff]  }
 0x29c   :  { %v1843_v44 = vmul.f32 0.5, %v2998_v38  ;;  %v1848_v48 = vmul.f32 0.5, %v3000_v47  ;;  %v3436_v35 = vld [vmem:[#allocation2 + $0x3e4] ss:$16 sps:$4 sm:$0xff]   ;;  %v3439_v36 = vld [vmem:[#allocation2 + $0x3ec] ss:$16 sps:$4 sm:$0xff]  }
 0x29d   :  { %3450 = vtanh.f32 %v1839_v41  ;;  %v3434_v37 = vld [vmem:[#allocation2 + $0x3e0] ss:$16 sps:$4 sm:$0xff]   ;;  %v3437_v38 = vld [vmem:[#allocation2 + $0x3e8] ss:$16 sps:$4 sm:$0xff]  }
 0x29e   :  { %3452 = vtanh.f32 %v1843_v44  ;;  %v2719_v39 = vld [vmem:[%s3975_s3 + $0x8] sm:$0xf] }
 0x29f   :  { %3454 = vtanh.f32 %v2999_v45  ;;  %v867_v40 = vrot.slane %v2719_v39, %v3781_v15  ;;  %v871_v41 = vrot.slane %v2719_v39, %v3786_v17  ;;  %v875_v45 = vrot.slane %v2719_v39, %v3789_v19 }
 0x2a0   :  { %3456 = vtanh.f32 %v1848_v48 }
 0x2a7   :  { %v3451_v49 = vpop.eup %3450 }
 0x2a8   :  { %v3453_v50 = vpop.eup %3452  ;;  %v1841_v51 = vadd.f32 1.0, %v3451_v49 }
 0x2a9   :  { %v1845_v52 = vadd.f32 1.0, %v3453_v50  ;;  %v3455_v55 = vpop.eup %3454 }
 0x2aa   :  { %v1842_v53 = vmul.f32 0.5, %v1841_v51  ;;  %v3457_v60 = vpop.eup %3456 }
 0x2ab   :  { %v1846_v56 = vmul.f32 0.5, %v1845_v52  ;;  %v1850_v61 = vadd.f32 1.0, %v3457_v60 }
 0x2ac   :  { %v1855_v57 = vmul.f32 %v3455_v55, %v1842_v53 }
 0x2ad   :  { %v1854_v58 = vmul.f32 %v2850_v54, %v1846_v56  ;;  %v1851_v62 = vmul.f32 0.5, %v1850_v61  ;;  %v879_v56 = vrot.slane %v2719_v39, %v3793_v26  ;;  %v2477_v39 = vld [vmem:[%s3978_s6 + $0x70] sm:$0xff] }
 0x2af   :  { %v1856_v59 = vadd.f32 %v1855_v57, %v1854_v58 }
 0x2b1   :  { %3458 = vtanh.f32 %v1856_v59  ;;  %1862 = vst [vmem:[#allocation13 + $0x1] sm:$0x1] %v1856_v59 }
 0x2bb   :  { %v3459_v63 = vpop.eup %3458 }
 0x2bc   :  { %v1858_v1 = vmul.f32 %v3459_v63, %v1851_v62 }
 0x2be   :  { %1860 = vst [vmem:[#allocation11 + $0x1] sm:$0x1] %v1858_v1  ;;  %v1863_v2 = vpack.c.bf16 %v1858_v1, %v1858_v1  ;;  %v2883_v1 = vld [vmem:[%s3977_s5 + $0x2] sm:$0x1] }
 0x2c0   :  { %2090 = vmatmul.mubr.bf16.vlgmr.msra.gmra.mrb[8].mxu0 %v1863_v2  ;;  %2131 = vmatmul.mubr.bf16.vlgmr.msra.gmra.mrb[8].mxu1 %v1863_v2 }
 0x2c1   :  { %2389 = vmatprep.mubr.bf16.mxu0 %v3652_v0  ;;  %2430 = vmatprep.mubr.bf16.mxu1 %v3652_v0 }
 0x2c2   :  { %2358 = vmatpush1.bf16.msra.mxu0 %v3392_v5  ;;  %2399 = vmatpush1.bf16.msra.mxu1 %v3395_v6 }
 0x2c3   :  { %2359 = vmatprep.subr.bf16.mxu0 %v3400_v7  ;;  %2400 = vmatprep.subr.bf16.mxu1 %v3403_v8 }
 0x2c6   :  { %2360 = vmatpush1.bf16.msra.mxu0 %v3398_v9  ;;  %2401 = vmatpush1.bf16.msra.mxu1 %v3401_v10 }
 0x2c7   :  { %2361 = vmatprep.subr.bf16.mxu0 %v3406_v11  ;;  %2402 = vmatprep.subr.bf16.mxu1 %v3409_v12 }
 0x2ca   :  { %2362 = vmatpush1.bf16.msra.mxu0 %v3404_v13  ;;  %2403 = vmatpush1.bf16.msra.mxu1 %v3407_v14  ;;  %v2463_v13 = vld [vmem:[%s3978_s6] sm:$0xff]  ;;  %v2464_v14 = vld [vmem:[%s3978_s6 + $0x8] sm:$0xff] }
 0x2cb   :  { %2363 = vmatprep.subr.bf16.mxu0 %v3412_v16  ;;  %2404 = vmatprep.subr.bf16.mxu1 %v3415_v18  ;;  %v2970_v16 = vpack.c.bf16 %v2464_v14, %v2463_v13  ;;  %v3653_v18 = vmov 0.0|0.0  }
 0x2ce   :  { %2364 = vmatpush1.bf16.msra.mxu0 %v3410_v20  ;;  %2405 = vmatpush1.bf16.msra.mxu1 %v3413_v21  ;;  %v2465_v20 = vld [vmem:[%s3978_s6 + $0x10] sm:$0xff]  ;;  %v2466_v21 = vld [vmem:[%s3978_s6 + $0x18] sm:$0xff] }
 0x2cf   :  { %2365 = vmatprep.subr.bf16.mxu0 %v3418_v22  ;;  %2406 = vmatprep.subr.bf16.mxu1 %v3421_v23  ;;  %v2973_v22 = vpack.c.bf16 %v2466_v21, %v2465_v20  ;;  %v2467_v23 = vld [vmem:[%s3978_s6 + $0x20] sm:$0xff] }
 0x2d2   :  { %2366 = vmatpush1.bf16.msra.mxu0 %v3416_v24  ;;  %2407 = vmatpush1.bf16.msra.mxu1 %v3419_v25  ;;  %v2468_v24 = vld [vmem:[%s3978_s6 + $0x28] sm:$0xff] }
 0x2d3   :  { %2367 = vmatprep.subr.bf16.mxu0 %v3424_v27  ;;  %2408 = vmatprep.subr.bf16.mxu1 %v3427_v28  ;;  %v2976_v25 = vpack.c.bf16 %v2468_v24, %v2467_v23  ;;  %v2469_v27 = vld [vmem:[%s3978_s6 + $0x30] sm:$0xff]  ;;  %v2470_v28 = vld [vmem:[%s3978_s6 + $0x38] sm:$0xff] }
 0x2d6   :  { %2368 = vmatpush1.bf16.msra.mxu0 %v3422_v29  ;;  %2409 = vmatpush1.bf16.msra.mxu1 %v3425_v30  ;;  %v2979_v29 = vpack.c.bf16 %v2470_v28, %v2469_v27  ;;  %v2471_v30 = vld [vmem:[%s3978_s6 + $0x40] sm:$0xff] }
 0x2d7   :  { %2369 = vmatprep.subr.bf16.mxu0 %v3430_v31  ;;  %2410 = vmatprep.subr.bf16.mxu1 %v3433_v32  ;;  %v2472_v31 = vld [vmem:[%s3978_s6 + $0x48] sm:$0xff] }
 0x2d8   :  { %v2982_v32 = vpack.c.bf16 %v2472_v31, %v2471_v30 }
 0x2da   :  { %2370 = vmatpush1.bf16.msra.mxu0 %v3428_v33  ;;  %2411 = vmatpush1.bf16.msra.mxu1 %v3431_v34  ;;  %v2473_v33 = vld [vmem:[%s3978_s6 + $0x50] sm:$0xff]  ;;  %v2474_v34 = vld [vmem:[%s3978_s6 + $0x58] sm:$0xff] }
 0x2db   :  { %2371 = vmatprep.subr.bf16.mxu0 %v3436_v35  ;;  %2412 = vmatprep.subr.bf16.mxu1 %v3439_v36  ;;  %v2985_v35 = vpack.c.bf16 %v2474_v34, %v2473_v33  ;;  %v2475_v36 = vld [vmem:[%s3978_s6 + $0x60] sm:$0xff] }
 0x2de   :  { %2372 = vmatpush1.bf16.msra.mxu0 %v3434_v37  ;;  %2413 = vmatpush1.bf16.msra.mxu1 %v3437_v38  ;;  %v2476_v37 = vld [vmem:[%s3978_s6 + $0x68] sm:$0xff] }
 0x2df   :  { %2969 = vmatprep.subr.bf16.mxu0 %v3653_v18  ;;  %v2988_v38 = vpack.c.bf16 %v2476_v37, %v2475_v36 }
 0x393   :  { %v2091_v42 = vpop.f32.mrb[8].mxu0  ;;  %v2132_v43 = vpop.f32.mrb[8].mxu1 }
 0x394   :  { %v3001_v44 = vadd.f32 %v2091_v42, %v867_v40  ;;  %v2093_v46 = vpop.f32.mrb[9].mxu0  ;;  %v2134_v47 = vpop.f32.mrb[9].mxu1  ;;  %v3003_v55 = vadd.f32 %v2132_v43, %v875_v45  ;;  %v2478_v40 = vld [vmem:[%s3978_s6 + $0x78] sm:$0xff]  ;;  %v3655_v42 = vmov 0.0   ;;  %v2753_v43 = vld [vmem:[%s3975_s3 + $0xc] sm:$0xf] }
 0x395   :  { %v3002_v48 = vadd.f32 %v2093_v46, %v871_v41  ;;  %v2095_v49 = vpop.f32.mrb[10].mxu0  ;;  %v2136_v50 = vpop.f32.mrb[10].mxu1  ;;  %v3004_v57 = vadd.f32 %v2134_v47, %v879_v56  ;;  %v2991_v41 = vpack.c.bf16 %v2478_v40, %v2477_v39  ;;  %v1172_v45 = vrot.slane %v2753_v43, %v3786_v17 }
 0x396   :  { %v2139_v51 = vmul.f32 0.5, %v3001_v44  ;;  %v2096_v52 = vpop.f32.mrb[11].mxu0  ;;  %v2137_v53 = vpop.f32.mrb[11].mxu1  ;;  %v1168_v44 = vrot.slane %v2753_v43, %v3781_v15  ;;  %v1176_v49 = vrot.slane %v2753_v43, %v3789_v19  ;;  %v1180_v15 = vrot.slane %v2753_v43, %v3793_v26 }
 0x397   :  { %v2143_v54 = vmul.f32 0.5, %v3002_v48  ;;  %v2148_v58 = vmul.f32 0.5, %v3004_v57 }
 0x398   :  { %3460 = vtanh.f32 %v2139_v51 }
 0x399   :  { %3462 = vtanh.f32 %v2143_v54 }
 0x39a   :  { %3464 = vtanh.f32 %v3003_v55 }
 0x39b   :  { %3466 = vtanh.f32 %v2148_v58 }
 0x3a2   :  { %v3461_v59 = vpop.eup %3460 }
 0x3a3   :  { %v3463_v60 = vpop.eup %3462  ;;  %v2141_v61 = vadd.f32 1.0, %v3461_v59 }
 0x3a4   :  { %v2145_v62 = vadd.f32 1.0, %v3463_v60  ;;  %v3465_v2 = vpop.eup %3464 }
 0x3a5   :  { %v2142_v63 = vmul.f32 0.5, %v2141_v61  ;;  %v3467_v7 = vpop.eup %3466 }
 0x3a6   :  { %v2146_v3 = vmul.f32 0.5, %v2145_v62  ;;  %v2150_v8 = vadd.f32 1.0, %v3467_v7 }
 0x3a7   :  { %v2155_v4 = vmul.f32 %v3465_v2, %v2142_v63  ;;  %v2916_v2 = vld [vmem:[%s3977_s5 + $0x3] sm:$0x1]  ;;  %s3656_s5 = smov 1  }
 0x3a8   :  { %v2154_v5 = vmul.f32 %v2883_v1, %v2146_v3  ;;  %v2151_v9 = vmul.f32 0.5, %v2150_v8 }
 0x3aa   :  { %v2156_v6 = vadd.f32 %v2155_v4, %v2154_v5 }
 0x3ac   :  { %3468 = vtanh.f32 %v2156_v6  ;;  %2162 = vst [vmem:[#allocation13 + $0x2] sm:$0x1] %v2156_v6 }
 0x3b6   :  { %v3469_v10 = vpop.eup %3468 }
 0x3b7   :  { %v2158_v11 = vmul.f32 %v3469_v10, %v2151_v9 }
 0x3b9   :  { %2160 = vst [vmem:[#allocation11 + $0x2] sm:$0x1] %v2158_v11  ;;  %v2163_v12 = vpack.c.bf16 %v2158_v11, %v2158_v11 }
 0x3bb   :  { %2390 = vmatmul.mubr.bf16.vlgmr.msra.gmra.mrb[12].mxu0 %v2163_v12  ;;  %2431 = vmatmul.mubr.bf16.vlgmr.msra.gmra.mrb[12].mxu1 %v2163_v12  ;;  %v2479_v12 = vld [vmem:[%s3979_s7] sm:$0x1]  ;;  %s3657_s7 = smov 127  }
 0x3bc   :  { %2971 = vmatpush3.bf16.msra.mxu0 %v2970_v16  ;;  %2966 = vmatprep.mubr.msk.f32.mxu0 %vm3654_vm0, %v3655_v42 }
 0x3bd   :  { %2972 = vmatprep.subr.bf16.mxu0 %v3653_v18 }
 0x3c0   :  { %2974 = vmatpush3.bf16.msra.mxu0 %v2973_v22 }
 0x3c1   :  { %2975 = vmatprep.subr.bf16.mxu0 %v3653_v18 }
 0x3c4   :  { %2977 = vmatpush3.bf16.msra.mxu0 %v2976_v25 }
 0x3c5   :  { %2978 = vmatprep.subr.bf16.mxu0 %v3653_v18 }
 0x3c8   :  { %2980 = vmatpush3.bf16.msra.mxu0 %v2979_v29 }
 0x3c9   :  { %2981 = vmatprep.subr.bf16.mxu0 %v3653_v18 }
 0x3cc   :  { %2983 = vmatpush3.bf16.msra.mxu0 %v2982_v32 }
 0x3cd   :  { %2984 = vmatprep.subr.bf16.mxu0 %v3653_v18 }
 0x3d0   :  { %2986 = vmatpush3.bf16.msra.mxu0 %v2985_v35 }
 0x3d1   :  { %2987 = vmatprep.subr.bf16.mxu0 %v3653_v18 }
 0x3d4   :  { %2989 = vmatpush3.bf16.msra.mxu0 %v2988_v38 }
 0x3d5   :  { %2990 = vmatprep.subr.bf16.mxu0 %v3653_v18 }
 0x3d8   :  { %2992 = vmatpush3.bf16.msra.mxu0 %v2991_v41 }
 0x48e   :  { %v2391_v46 = vpop.f32.mrb[12].mxu0  ;;  %v2432_v47 = vpop.f32.mrb[12].mxu1 }
 0x48f   :  { %v3005_v48 = vadd.f32 %v2391_v46, %v1168_v44  ;;  %v2393_v50 = vpop.f32.mrb[13].mxu0  ;;  %v2434_v51 = vpop.f32.mrb[13].mxu1  ;;  %v3007_v59 = vadd.f32 %v2432_v47, %v1176_v49 }
 0x490   :  { %v3006_v52 = vadd.f32 %v2393_v50, %v1172_v45  ;;  %v2395_v53 = vpop.f32.mrb[14].mxu0  ;;  %v2436_v54 = vpop.f32.mrb[14].mxu1  ;;  %v3008_v17 = vadd.f32 %v2434_v51, %v1180_v15 }
 0x491   :  { %v2439_v55 = vmul.f32 0.5, %v3005_v48  ;;  %v2396_v56 = vpop.f32.mrb[15].mxu0  ;;  %v2437_v57 = vpop.f32.mrb[15].mxu1 }
 0x492   :  { %v2443_v58 = vmul.f32 0.5, %v3006_v52  ;;  %v2448_v60 = vmul.f32 0.5, %v3008_v17 }
 0x493   :  { %3470 = vtanh.f32 %v2439_v55 }
 0x494   :  { %3472 = vtanh.f32 %v2443_v58 }
 0x495   :  { %3474 = vtanh.f32 %v3007_v59 }
 0x496   :  { %3476 = vtanh.f32 %v2448_v60 }
 0x49d   :  { %v3471_v61 = vpop.eup %3470 }
 0x49e   :  { %v3473_v62 = vpop.eup %3472  ;;  %v2441_v19 = vadd.f32 1.0, %v3471_v61 }
 0x49f   :  { %v2445_v63 = vadd.f32 1.0, %v3473_v62  ;;  %v3475_v3 = vpop.eup %3474 }
 0x4a0   :  { %v2442_v1 = vmul.f32 0.5, %v2441_v19  ;;  %v3477_v26 = vpop.eup %3476 }
 0x4a1   :  { %v2446_v4 = vmul.f32 0.5, %v2445_v63  ;;  %v2450_v8 = vadd.f32 1.0, %v3477_v26 }
 0x4a2   :  { %v2455_v5 = vmul.f32 %v3475_v3, %v2442_v1 }
 0x4a3   :  { %v2454_v6 = vmul.f32 %v2916_v2, %v2446_v4  ;;  %v2451_v9 = vmul.f32 0.5, %v2450_v8 }
 0x4a5   :  { %v2456_v7 = vadd.f32 %v2455_v5, %v2454_v6 }
 0x4a7   :  { %3478 = vtanh.f32 %v2456_v7  ;;  %2462 = vst [vmem:[#allocation13 + $0x3] sm:$0x1] %v2456_v7 }
 0x4b1   :  { %v3479_v10 = vpop.eup %3478 }
 0x4b2   :  { %v2458_v11 = vmul.f32 %v3479_v10, %v2451_v9 }
 0x4b4   :  { %2460 = vst [vmem:[#allocation11 + $0x3] sm:$0x1] %v2458_v11  ;;  %2967 = vmatmul.mubr.f32.vlgmr.msra.gmra.mrb[16].mxu0 %v2458_v11 }
 0x587   :  { %v2546_v13 = vpop.f32.mrb[16].mxu0 }
 0x588   :  { %v2547_v14 = vadd.f32 %v2546_v13, %v2479_v12  ;;  %v2968_v16 = vpop.f32.mrb[17].mxu0 }
 0x58a   :  { %v2551_v18 = vsel %vm2550_vm1, %v2547_v14, -inf }
 0x58b   :  { %2552 = vmax.xlane.f32.xlu0 %v2551_v18 }
 0x618   :  { %v2553_v20 = vpop.xlane.xlu0 %2552 }
 0x619   :  { %v2554_v21 = vsub.f32 %v2547_v14, %v2553_v20 }
 0x61b   :  { %v2555_v22 = vmul.f32 1.442695, %v2554_v21 }
 0x61d   :  { %3480 = vpow2.f32 %v2555_v22 }
 0x627   :  { %v3481_v23 = vpop.eup %3480 }
 0x628   :  { %v2557_v24 = vsel %vm2550_vm1, %v3481_v23, 0.0 }
 0x629   :  { %2558 = vadd.xlane.f32.xlu0 %v2557_v24 }
 0x6b6   :  { %v2559_v25 = vpop.xlane.xlu0 %2558 }
 0x6b7   :  { %3482 = vrcp.f32 %v2559_v25 }
 0x6c1   :  { %v3483_v27 = vpop.eup %3482 }
 0x6c2   :  { %v3886_v28 = vmul.f32 %v3483_v27, %v3481_v23 }
 0x6c4   :  { %2562 = vst.msk [vmem:[#allocation7] sm:$0x1] %vm2550_vm1, %v3886_v28  ;;  %2564 = vrot.lane.b32.xlu1 %v3886_v28, %s3656_s5 }
 0x6c8   :  { %2573 = vrot.lane.b32.xlu1 %v3886_v28, %s3657_s7 }
 0x6c9   :  { %3539 = shalt.err (!%p3536_p6)
}
 0x6ca   :  { %s3540_s2 = scalar_lea.hbm %s3983_s11, 64 }
 0x6cb   :  { %p3541_p7 = scmp.ne.s32.totalorder %s3983_s11, %s3540_s2  ;;  %p3544_p8 = scmp.lt.u32.totalorder %s3540_s2, %s3983_s11 }
 0x6cd   :  { %p3546_p9 = pnand %p3544_p8, %p3541_p7 }
 0x6cf   :  { %3549 = shalt.err (!%p3546_p9)
}
 0x6d0   :  { %2619 = dma.vmem_to_hbm [thread:$0]  %s2614_s26, 64, %s3983_s11, [#allocation12], %s3650_s14, %s3650_s14, %s3656_s5  }
 0x6d1   :  { %s3659_s17 = smov [#allocation7]  }
 0x6d2   :  { %s2584_s4 = sshll.u32 %s3659_s17, 4  ;;  %s2585_s4 = int_to_ptr.vmem [resolvable:$true] %s2584_s4 }
 0x6d3   :  { %s3550_s18 = scalar_lea.vmem %s2585_s4, 16  ;;  %s3554_s0 = scalar_lea.vmem %s2585_s4, 32 }
 0x6d4   :  { %p3551_p10 = scmp.ne.s32.totalorder %s2585_s4, %s3550_s18  ;;  %p3555_p11 = scmp.lt.s32.totalorder %s2585_s4, %s2585_s4 }
 0x6d5   :  { %p3556_p12 = scmp.lt.s32.totalorder %s3554_s0, %s3550_s18 }
 0x6d7   :  { %p3557_p13 = por %p3556_p12, %p3555_p11 }
 0x6d9   :  { %p3558_p0 = pnand %p3557_p13, %p3551_p10 }
 0x6db   :  { %3561 = shalt.err (!%p3558_p0)
}
 0x6dc   :  { %s3562_s21 = scalar_lea.hbm %s3980_s8, 16 }
 0x6dd   :  { %p3563_p1 = scmp.ne.s32.totalorder %s3980_s8, %s3562_s21  ;;  %p3566_p2 = scmp.lt.u32.totalorder %s3562_s21, %s3980_s8 }
 0x6df   :  { %p3568_p3 = pnand %p3566_p2, %p3563_p1 }
 0x6e1   :  { %3571 = shalt.err (!%p3568_p3)
}
 0x6e2   :  { %2587 = dma.vmem_to_hbm [thread:$0]  %s2585_s4, 16, %s3980_s8, [#allocation4]  }
 0x6e3   :  { %s3660_s26 = smov [#allocation13]  }
 0x6e4   :  { %s2625_s27 = sshll.u32 %s3660_s26, 4  ;;  %s2626_s27 = int_to_ptr.vmem [resolvable:$true] %s2625_s27 }
 0x6e5   :  { %s3572_s1 = scalar_lea.vmem %s2626_s27, 64  ;;  %p3577_p5 = scmp.lt.s32.totalorder %s2626_s27, %s2626_s27 }
 0x6e6   :  { %p3573_p4 = scmp.ne.s32.totalorder %s2626_s27, %s3572_s1  ;;  %p3578_p6 = scmp.lt.s32.totalorder %s3572_s1, %s3572_s1 }
 0x6e8   :  { %p3579_p7 = por %p3578_p6, %p3577_p5 }
 0x6ea   :  { %p3580_p8 = pnand %p3579_p7, %p3573_p4 }
 0x736   :  { %v2565_v29 = vpop.permute.xlu1 %2564 }
 0x737   :  { %3583 = shalt.err (!%p3580_p8)
}
 0x738   :  { %s3584_s28 = scalar_lea.hbm %s3984_s12, 64 }
 0x739   :  { %p3585_p9 = scmp.ne.s32.totalorder %s3984_s12, %s3584_s28  ;;  %p3588_p10 = scmp.lt.u32.totalorder %s3584_s28, %s3984_s12 }
 0x73b   :  { %p3590_p11 = pnand %p3588_p10, %p3585_p9 }
 0x73d   :  { %3593 = shalt.err (!%p3590_p11)
}
 0x73e   :  { %2631 = dma.vmem_to_hbm [thread:$0]  %s2626_s27, 64, %s3984_s12, [#allocation12], %s3650_s14, %s3650_s14, %s3656_s5   ;;  %vm2567_vm2 = vcmp.gt.f32.partialorder %v3886_v28, %v2565_v29  ;;  %v2574_v31 = vpop.permute.xlu1 %2573  ;;  %vm2571_vm3 = vcmask 0  }
 0x73f   :  { %v2568_v30 = vsel %vm2567_vm2, 1, %v3652_v0  ;;  %v2576_v32 = vmax.f32 %v3886_v28, %v2574_v31  ;;  %s3661_s17 = smov [#allocation8]   ;;  %s3662_s18 = smov [#allocation10]  }
 0x740   :  { %2569 = vrot.lane.b32.xlu0 %v2568_v30, %s3657_s7  ;;  %s2594_s4 = sshll.u32 %s3661_s17, 4  ;;  %s2604_s0 = sshll.u32 %s3662_s18, 4  ;;  %s2595_s4 = int_to_ptr.vmem [resolvable:$true] %s2594_s4  ;;  %s3940_s0 = int_to_ptr.vmem [resolvable:$true] %s2604_s0 }
 0x741   :  { %2577 = vst.msk [vmem:[#allocation10] sm:$0x1] %vm2571_vm3, %v2576_v32  ;;  %s3594_s12 = scalar_lea.vmem %s2595_s4, 16  ;;  %s3598_s14 = scalar_lea.vmem %s2595_s4, 32 }
 0x742   :  { %p3595_p12 = scmp.ne.s32.totalorder %s2595_s4, %s3594_s12  ;;  %p3599_p13 = scmp.lt.s32.totalorder %s2595_s4, %s2595_s4 }
 0x743   :  { %p3600_p0 = scmp.lt.s32.totalorder %s3598_s14, %s3594_s12 }
 0x745   :  { %p3601_p1 = por %p3600_p0, %p3599_p13 }
 0x747   :  { %p3602_p2 = pnand %p3601_p1, %p3595_p12 }
 0x7b2   :  { %v2570_v33 = vpop.permute.xlu0 %2569 }
 0x7b3   :  { %2572 = vst.msk [vmem:[#allocation8] sm:$0x1] %vm2571_vm3, %v2570_v33 }
 0x7b4   :  { %3605 = shalt.err (!%p3602_p2)
}
 0x7b5   :  { %s3606_s19 = scalar_lea.hbm %s3981_s9, 16 }
 0x7b6   :  { %p3607_p3 = scmp.ne.s32.totalorder %s3981_s9, %s3606_s19  ;;  %p3610_p4 = scmp.lt.u32.totalorder %s3606_s19, %s3981_s9 }
 0x7b8   :  { %p3612_p5 = pnand %p3610_p4, %p3607_p3 }
 0x7ba   :  { %3615 = shalt.err (!%p3612_p5)
}
 0x7bb   :  { %2597 = dma.vmem_to_hbm [thread:$0]  %s2595_s4, 16, %s3981_s9, [#allocation9]  }
 0x7bc   :  { %s3616_s24 = scalar_lea.vmem %s3940_s0, 16  ;;  %s3620_s25 = scalar_lea.vmem %s3940_s0, 32 }
 0x7bd   :  { %p3617_p6 = scmp.ne.s32.totalorder %s3940_s0, %s3616_s24  ;;  %p3621_p7 = scmp.lt.s32.totalorder %s3940_s0, %s3940_s0 }
 0x7be   :  { %p3622_p8 = scmp.lt.s32.totalorder %s3620_s25, %s3616_s24 }
 0x7c0   :  { %p3623_p9 = por %p3622_p8, %p3621_p7 }
 0x7c2   :  { %p3624_p10 = pnand %p3623_p9, %p3617_p6 }
 0x7c4   :  { %3627 = shalt.err (!%p3624_p10)
}
 0x7c5   :  { %s3628_s1 = scalar_lea.hbm %s3982_s10, 16 }
 0x7c6   :  { %p3629_p11 = scmp.ne.s32.totalorder %s3982_s10, %s3628_s1  ;;  %p3632_p12 = scmp.lt.u32.totalorder %s3628_s1, %s3982_s10 }
 0x7c8   :  { %p3634_p13 = pnand %p3632_p12, %p3629_p11 }
 0x7ca   :  { %3637 = shalt.err (!%p3634_p13)
}
 0x7cb   :  { %2607 = dma.vmem_to_hbm [thread:$0]  %s3940_s0, 16, %s3982_s10, [#allocation9]  }
 0x7cc   :  { %3642 = dma.done.wait [#allocation4], 16  }
 0x7cd   :  { %3643 = vsyncadd [#allocation4], 4294967280 }
 0x7ce   :  { %3644 = dma.done.wait [#allocation9], 32  }
 0x7cf   :  { %3645 = vsyncadd [#allocation9], 4294967264 }
 0x7d0   :  { %3646 = dma.done.wait [#allocation12], 128  }
 0x7d1   :  { %3647 = vsyncadd [#allocation12], 4294967168 }
 0x7d2   :  { %2647 = vsyncpa [#allocation3], 1 }
 0x7d3   :  { %2648 = vsyncpa [#allocation6], 1 }
 0x7d4   :  { %2649 = vsyncpa [#allocation4], 1 }
 0x7d5   :  { %2650 = vsyncpa [#allocation9], 1 }
 0x7d6   :  { %2651 = vsyncpa [#allocation12], 1 }

</bundles_post_ra>
